<compile_context>
chip_gen: v7x
topology: tpu7x:2x2x1
jax: 0.10.0
libtpu: 0.0.40
codegen_flags: <defaults>
</compile_context>

<pallas_src>
import functools

import jax
import jax.numpy as jnp
from jax import lax
from jax.experimental import pallas as pl
from jax.experimental.pallas import tpu as pltpu

IN_SIZE = 226
IN_PAD = 256        # 226 -> 256: (8,128)-aligned contraction dim for fc1
H1 = 1024
H2 = 512
OUT_SIZE = 11
OUT_PAD = 128       # 11 -> 128: lane-dense output block (no masked vst)
BN_EPS = 1e-5


def _round_up(n, m):
    return ((n + m - 1) // m) * m


@functools.lru_cache(maxsize=None)
def _chip_config():
    """Generation-aware tile / VMEM settings (conservative fallback on failure)."""
    vmem_bytes = None
    try:
        vmem_bytes = int(pltpu.get_tpu_info().vmem_capacity_bytes)
    except Exception:
        vmem_bytes = None
    if vmem_bytes is not None and vmem_bytes >= 100 * 1024 * 1024:
        # v5e / v6e: 128 MiB physical VMEM -> bigger fused batches, generous limit.
        return {"tile_b": 512, "max_fused_rows": 2048,
                "vmem_limit": 64 * 1024 * 1024}
    # v7x (64 MiB per TensorCore) or unknown chip: stay conservative.
    return {"tile_b": 512, "max_fused_rows": 1024,
            "vmem_limit": 40 * 1024 * 1024}


# ----------------------------------------------------------------------------
# One-time parameter preparation (hoisted out of the per-call wrapper).
# ----------------------------------------------------------------------------
def prepare_params(params):
    """Pad + cast weights once; reuse the result across forward calls."""
    w1, b1, gamma, beta, w2, b2, w3, b3 = params
    w1p = jnp.zeros((IN_PAD, H1), jnp.float32).at[:IN_SIZE, :].set(w1).astype(jnp.bfloat16)
    w3p = jnp.zeros((H2, OUT_PAD), jnp.float32).at[:, :OUT_SIZE].set(w3).astype(jnp.bfloat16)
    b3p = jnp.zeros((1, OUT_PAD), jnp.float32).at[:, :OUT_SIZE].set(b3)
    return {
        "w1p": w1p, "b1": b1,
        "gamma": gamma, "beta": beta,
        "w2": w2, "w2b": w2.astype(jnp.bfloat16), "b2": b2,
        "w3p": w3p, "b3p": b3p,
        "rb1": jnp.maximum(b1, 0.0),   # relu(b1): value of h1 on zero-padded rows
    }


def _const_spec(a):
    """BlockSpec for a small array that stays fully VMEM-resident across the grid."""
    n = a.ndim
    return pl.BlockSpec(a.shape, lambda *_, n=n: (0,) * n)


# ----------------------------------------------------------------------------
# Fused single-block kernel (whole padded batch resident in VMEM).
# Centered two-pass variance; padded rows corrected analytically (no masked copy).
# ----------------------------------------------------------------------------
def _fused_kernel(n_valid, n_pad, x_ref, w1_ref, b1_ref, g_ref, bt_ref,
                  w2_ref, b2_ref, w3_ref, b3_ref, o_ref):
    # fc1 + ReLU (bf16 operands, f32 accumulate)
    h1 = jnp.dot(x_ref[...], w1_ref[...],
                 preferred_element_type=jnp.float32) + b1_ref[...]
    h1 = jnp.maximum(h1, 0.0)                                   # (Bp, 1024) f32

    inv_n = 1.0 / float(n_valid)
    s1 = jnp.sum(h1, axis=0, keepdims=True)                     # (1, 1024)
    if n_pad:  # static python branch: padded rows each contribute relu(b1)
        rb1 = jnp.maximum(b1_ref[...], 0.0)
        s1 = s1 - float(n_pad) * rb1
    mean = s1 * inv_n

    d = h1 - mean
    ss = jnp.sum(d * d, axis=0, keepdims=True)
    if n_pad:
        dp = rb1 - mean
        ss = ss - float(n_pad) * (dp * dp)
    var = jnp.maximum(ss * inv_n, 0.0)                          # biased variance

    h1n = d * (lax.rsqrt(var + BN_EPS) * g_ref[...]) + bt_ref[...]

    # fc2 + ReLU
    h2 = jnp.dot(h1n.astype(jnp.bfloat16), w2_ref[...],
                 preferred_element_type=jnp.float32) + b2_ref[...]
    h2 = jnp.maximum(h2, 0.0)                                   # (Bp, 512)

    # fc3 (padded to 128 lanes) + sigmoid
    logits = jnp.dot(h2.astype(jnp.bfloat16), w3_ref[...],
                     preferred_element_type=jnp.float32) + b3_ref[...]
    o_ref[...] = jax.nn.sigmoid(logits)                         # (Bp, 128)


# ----------------------------------------------------------------------------
# Batch-tiled path, pass 1: accumulate sum / sum-of-squares of relu(x@W1+b1).
# Grid = (nsplit, nb_per); leading axis "parallel" (per-core partial sums on
# v7x), inner axis "arbitrary" with a core-resident (8, H1) accumulator block
# (row 0 = sum, row 1 = sum of squares). No per-tile masking: padded rows are
# corrected analytically in the wrapper.
# ----------------------------------------------------------------------------
def _stats_kernel(x_ref, w1_ref, b1_ref, s_ref):
    @pl.when(pl.program_id(1) == 0)
    def _():
        s_ref[...] = jnp.zeros_like(s_ref)

    h1 = jnp.dot(x_ref[...], w1_ref[...],
                 preferred_element_type=jnp.float32) + b1_ref[...]
    h1 = jnp.maximum(h1, 0.0)                                   # (TB, 1024)

    s_ref[0:1, :] += jnp.sum(h1, axis=0, keepdims=True)
    s_ref[1:2, :] += jnp.sum(h1 * h1, axis=0, keepdims=True)


# ----------------------------------------------------------------------------
# Batch-tiled path, pass 2: recompute fc1 tile; BN is pre-folded into fc2
# (w2', b2' computed in the wrapper), then fc3 + sigmoid. Batch tiles are
# independent -> "parallel" grid axis (megacore on v7x).
# ----------------------------------------------------------------------------
def _apply_kernel(x_ref, w1_ref, b1_ref, w2_ref, b2_ref, w3_ref, b3_ref, o_ref):
    h1 = jnp.dot(x_ref[...], w1_ref[...],
                 preferred_element_type=jnp.float32) + b1_ref[...]
    h1 = jnp.maximum(h1, 0.0)                                   # (TB, 1024)

    h2 = jnp.dot(h1.astype(jnp.bfloat16), w2_ref[...],
                 preferred_element_type=jnp.float32) + b2_ref[...]
    h2 = jnp.maximum(h2, 0.0)                                   # (TB, 512)

    logits = jnp.dot(h2.astype(jnp.bfloat16), w3_ref[...],
                     preferred_element_type=jnp.float32) + b3_ref[...]
    o_ref[...] = jax.nn.sigmoid(logits)                         # (TB, 128)


# ----------------------------------------------------------------------------
# Wrapper
# ----------------------------------------------------------------------------
def inverse_model_forward(x, prep, *, tile_b=None, max_fused_rows=None,
                          vmem_limit=None):
    """x: (B, 226) f32. prep: output of prepare_params(). Returns (B, 11) f32."""
    cfg = _chip_config()
    tile_b = cfg["tile_b"] if tile_b is None else tile_b
    max_fused_rows = cfg["max_fused_rows"] if max_fused_rows is None else max_fused_rows
    vmem_limit = cfg["vmem_limit"] if vmem_limit is None else vmem_limit

    w1p, b1 = prep["w1p"], prep["b1"]
    gamma, beta = prep["gamma"], prep["beta"]
    w2, w2b, b2 = prep["w2"], prep["w2b"], prep["b2"]
    w3p, b3p, rb1 = prep["w3p"], prep["b3p"], prep["rb1"]

    B = x.shape[0]
    fused = B <= max_fused_rows
    Bp = _round_up(B, 8) if fused else _round_up(max(B, tile_b), tile_b)
    n_pad = Bp - B

    # Pad + cast x in a single bf16 op (no intermediate padded f32 copy).
    xp = jnp.zeros((Bp, IN_PAD), jnp.bfloat16).at[:B, :IN_SIZE].set(
        x.astype(jnp.bfloat16))

    if fused:
        out = pl.pallas_call(
            functools.partial(_fused_kernel, B, n_pad),
            out_shape=jax.ShapeDtypeStruct((Bp, OUT_PAD), jnp.float32),
            grid_spec=pltpu.PrefetchScalarGridSpec(
                num_scalar_prefetch=0,
                grid=(1,),
                in_specs=[_const_spec(xp), _const_spec(w1p), _const_spec(b1),
                          _const_spec(gamma), _const_spec(beta),
                          _const_spec(w2b), _const_spec(b2),
                          _const_spec(w3p), _const_spec(b3p)],
                out_specs=pl.BlockSpec((Bp, OUT_PAD), lambda i: (0, 0)),
            ),
            compiler_params=pltpu.CompilerParams(
                dimension_semantics=("arbitrary",),
                vmem_limit_bytes=vmem_limit),
        )(xp, w1p, b1, gamma, beta, w2b, b2, w3p, b3p)
        return out[:B, :OUT_SIZE]

    # ---------------- batch-tiled two-pass path ----------------
    nb = Bp // tile_b
    nsplit = 2 if (nb % 2 == 0 and nb >= 2) else 1   # 2-core split when even
    nb_per = nb // nsplit

    # Pass 1: full-batch BN statistics (per-core resident accumulator blocks).
    stats = pl.pallas_call(
        _stats_kernel,
        out_shape=jax.ShapeDtypeStruct((8 * nsplit, H1), jnp.float32),
        grid_spec=pltpu.PrefetchScalarGridSpec(
            num_scalar_prefetch=0,
            grid=(nsplit, nb_per),
            in_specs=[pl.BlockSpec((tile_b, IN_PAD),
                                   lambda c, i, nb_per=nb_per: (c * nb_per + i, 0)),
                      _const_spec(w1p), _const_spec(b1)],
            out_specs=pl.BlockSpec((8, H1), lambda c, i: (c, 0)),
        ),
        compiler_params=pltpu.CompilerParams(
            dimension_semantics=("parallel", "arbitrary"),
            vmem_limit_bytes=vmem_limit),
    )(xp, w1p, b1)

    # Combine per-core partials + analytical correction for zero-padded rows
    # (each padded row contributes relu(b1) / relu(b1)^2 to the sums).
    st = stats.reshape(nsplit, 8, H1)
    s1 = st[:, 0, :].sum(axis=0, keepdims=True)
    s2 = st[:, 1, :].sum(axis=0, keepdims=True)
    if n_pad:
        s1 = s1 - float(n_pad) * rb1
        s2 = s2 - float(n_pad) * rb1 * rb1

    inv_n = 1.0 / float(B)
    mean = s1 * inv_n
    var = jnp.maximum(s2 * inv_n - mean * mean, 0.0)            # biased variance
    scale = gamma * lax.rsqrt(var + BN_EPS)                     # (1, 1024)

    # Fold BN into fc2: BN(h1)@W2 + b2 == h1 @ (diag(scale)@W2) + (beta-mean*scale)@W2 + b2
    w2f = (w2 * scale.reshape(H1, 1)).astype(jnp.bfloat16)      # (1024, 512) bf16
    b2f = b2 + (beta - mean * scale) @ w2                       # (1, 512) f32

    # Pass 2: fc1 recompute + folded fc2 + fc3 + sigmoid per batch tile.
    out = pl.pallas_call(
        _apply_kernel,
        out_shape=jax.ShapeDtypeStruct((Bp, OUT_PAD), jnp.float32),
        grid_spec=pltpu.PrefetchScalarGridSpec(
            num_scalar_prefetch=0,
            grid=(nb,),
            in_specs=[pl.BlockSpec((tile_b, IN_PAD), lambda i: (i, 0)),
                      _const_spec(w1p), _const_spec(b1),
                      _const_spec(w2f), _const_spec(b2f),
                      _const_spec(w3p), _const_spec(b3p)],
            out_specs=pl.BlockSpec((tile_b, OUT_PAD), lambda i: (i, 0)),
        ),
        compiler_params=pltpu.CompilerParams(
            dimension_semantics=("parallel",),      # megacore on v7x
            vmem_limit_bytes=vmem_limit),
    )(xp, w1p, b1, w2f, b2f, w3p, b3p)
    return out[:B, :OUT_SIZE]


# ----------------------------------------------------------------------------
# Params + pure-JAX f32 reference
# ----------------------------------------------------------------------------
def init_params(key):
    """Deterministic synthetic parameter init (PyTorch-style bounds), f32."""
    ks = jax.random.split(key, 8)

    def linear(kw, kb, fan_in, fan_out):
        bound = 1.0 / jnp.sqrt(float(fan_in))
        w = jax.random.uniform(kw, (fan_in, fan_out), jnp.float32, -bound, bound)
        b = jax.random.uniform(kb, (1, fan_out), jnp.float32, -bound, bound)
        return w, b

    w1, b1 = linear(ks[0], ks[1], IN_SIZE, H1)
    w2, b2 = linear(ks[2], ks[3], H1, H2)
    w3, b3 = linear(ks[4], ks[5], H2, OUT_SIZE)
    gamma = jnp.ones((1, H1), jnp.float32)   # BatchNorm1d(1024) defaults
    beta = jnp.zeros((1, H1), jnp.float32)
    return (w1, b1, gamma, beta, w2, b2, w3, b3)


def reference_forward(x, params):
    w1, b1, gamma, beta, w2, b2, w3, b3 = params
    h1 = jnp.maximum(x @ w1 + b1, 0.0)
    mean = jnp.mean(h1, axis=0, keepdims=True)
    var = jnp.mean((h1 - mean) ** 2, axis=0, keepdims=True)
    h1 = (h1 - mean) * lax.rsqrt(var + BN_EPS) * gamma + beta
    h2 = jnp.maximum(h1 @ w2 + b2, 0.0)
    return jax.nn.sigmoid(h2 @ w3 + b3)


if __name__ == "__main__":
    key = jax.random.PRNGKey(0)
    kx, kp = jax.random.split(key)
    params = init_params(kp)
    prep = prepare_params(params)   # one-time weight pad/cast, reused across calls

    # Small batch -> fully fused kernel path (no padded rows).
    B = 8
    x = jax.random.normal(kx, (B, IN_SIZE), jnp.float32)
    out = jax.block_until_ready(inverse_model_forward(x, prep))
    ref = reference_forward(x, params)
    assert out.shape == (B, OUT_SIZE)
    assert jnp.allclose(out, ref, atol=2e-2, rtol=2e-2), "fused path mismatch"

    # Tiled two-pass path, single-split stats, padded rows (analytic correction).
    B2 = 20
    x2 = jax.random.normal(jax.random.fold_in(kx, 1), (B2, IN_SIZE), jnp.float32)
    out2 = jax.block_until_ready(
        inverse_model_forward(x2, prep, tile_b=8, max_fused_rows=0))
    ref2 = reference_forward(x2, params)
    assert out2.shape == (B2, OUT_SIZE)
    assert jnp.allclose(out2, ref2, atol=2e-2, rtol=2e-2), "tiled path mismatch"

    # Tiled path with the 2-way stats split (even tile count) + padded rows.
    B3 = 28
    x3 = jax.random.normal(jax.random.fold_in(kx, 2), (B3, IN_SIZE), jnp.float32)
    out3 = jax.block_until_ready(
        inverse_model_forward(x3, prep, tile_b=8, max_fused_rows=0))
    ref3 = reference_forward(x3, params)
    assert out3.shape == (B3, OUT_SIZE)
    assert jnp.allclose(out3, ref3, atol=2e-2, rtol=2e-2), "split-stats path mismatch"

    print("KERNEL_OK")
</pallas_src>

<mosaic_0001>
module attributes {stable_mosaic.version = 11 : i64} {
  func.func @_fused_kernel(%arg0: i32, %arg1: memref<8x256xbf16, #tpu.memory_space<vmem>>, %arg2: memref<256x1024xbf16, #tpu.memory_space<vmem>>, %arg3: memref<1x1024xf32, #tpu.memory_space<vmem>>, %arg4: memref<1x1024xf32, #tpu.memory_space<vmem>>, %arg5: memref<1x1024xf32, #tpu.memory_space<vmem>>, %arg6: memref<1024x512xbf16, #tpu.memory_space<vmem>>, %arg7: memref<1x512xf32, #tpu.memory_space<vmem>>, %arg8: memref<512x128xbf16, #tpu.memory_space<vmem>>, %arg9: memref<1x128xf32, #tpu.memory_space<vmem>>, %arg10: memref<8x128xf32, #tpu.memory_space<vmem>>) attributes {dimension_semantics = [#tpu.dimension_semantics<arbitrary>], iteration_bounds = array<i64: 1>, scalar_prefetch = 0 : i64, scratch_operands = 0 : i64, tpu.core_type = #tpu.core_type<tc>, window_params = [{pipeline_mode = #tpu.pipeline_mode<synchronous>, transform_indices = @transform_0, window_bounds = array<i64: 8, 256>}, {pipeline_mode = #tpu.pipeline_mode<synchronous>, transform_indices = @transform_1, window_bounds = array<i64: 256, 1024>}, {pipeline_mode = #tpu.pipeline_mode<synchronous>, transform_indices = @transform_2, window_bounds = array<i64: 1, 1024>}, {pipeline_mode = #tpu.pipeline_mode<synchronous>, transform_indices = @transform_3, window_bounds = array<i64: 1, 1024>}, {pipeline_mode = #tpu.pipeline_mode<synchronous>, transform_indices = @transform_4, window_bounds = array<i64: 1, 1024>}, {pipeline_mode = #tpu.pipeline_mode<synchronous>, transform_indices = @transform_5, window_bounds = array<i64: 1024, 512>}, {pipeline_mode = #tpu.pipeline_mode<synchronous>, transform_indices = @transform_6, window_bounds = array<i64: 1, 512>}, {pipeline_mode = #tpu.pipeline_mode<synchronous>, transform_indices = @transform_7, window_bounds = array<i64: 512, 128>}, {pipeline_mode = #tpu.pipeline_mode<synchronous>, transform_indices = @transform_8, window_bounds = array<i64: 1, 128>}, {pipeline_mode = #tpu.pipeline_mode<synchronous>, transform_indices = @transform_9, window_bounds = array<i64: 8, 128>}]} {
    %c0 = arith.constant 0 : index
    %c0_0 = arith.constant 0 : index
    %0 = vector.load %arg1[%c0, %c0_0] : memref<8x256xbf16, #tpu.memory_space<vmem>>, vector<8x256xbf16>
    %c0_1 = arith.constant 0 : index
    %c0_2 = arith.constant 0 : index
    %1 = vector.load %arg2[%c0_1, %c0_2] : memref<256x1024xbf16, #tpu.memory_space<vmem>>, vector<256x1024xbf16>
    %cst = arith.constant dense<0.000000e+00> : vector<8x1024xf32>
    %2 = tpu.matmul %0, %1, %cst {dimension_numbers = #tpu.dot_dimension_numbers<[1], [0], [0], [1], [0, 0, 1, 1], [], []>} : vector<8x256xbf16>, vector<256x1024xbf16>, vector<8x1024xf32> -> vector<8x1024xf32>
    %c0_3 = arith.constant 0 : index
    %c0_4 = arith.constant 0 : index
    %3 = vector.load %arg3[%c0_3, %c0_4] : memref<1x1024xf32, #tpu.memory_space<vmem>>, vector<1x1024xf32>
    %4 = vector.broadcast %3 : vector<1x1024xf32> to vector<8x1024xf32>
    %5 = arith.addf %2, %4 : vector<8x1024xf32>
    %cst_5 = arith.constant 0.000000e+00 : f32
    %6 = vector.broadcast %cst_5 : f32 to vector<8x1024xf32>
    %7 = arith.maximumf %5, %6 : vector<8x1024xf32>
    %cst_6 = arith.constant dense<0.000000e+00> : vector<1024xf32>
    %8 = vector.multi_reduction <add>, %7, %cst_6 [0] : vector<8x1024xf32> to vector<1024xf32>
    %9 = vector.shape_cast %8 : vector<1024xf32> to vector<1x1024xf32>
    %cst_7 = arith.constant 1.250000e-01 : f32
    %10 = vector.broadcast %cst_7 : f32 to vector<1x1024xf32>
    %11 = arith.mulf %9, %10 : vector<1x1024xf32>
    %12 = vector.broadcast %11 : vector<1x1024xf32> to vector<8x1024xf32>
    %13 = arith.subf %7, %12 : vector<8x1024xf32>
    %14 = arith.mulf %13, %13 : vector<8x1024xf32>
    %cst_8 = arith.constant dense<0.000000e+00> : vector<1024xf32>
    %15 = vector.multi_reduction <add>, %14, %cst_8 [0] : vector<8x1024xf32> to vector<1024xf32>
    %16 = vector.shape_cast %15 : vector<1024xf32> to vector<1x1024xf32>
    %cst_9 = arith.constant 1.250000e-01 : f32
    %17 = vector.broadcast %cst_9 : f32 to vector<1x1024xf32>
    %18 = arith.mulf %16, %17 : vector<1x1024xf32>
    %cst_10 = arith.constant 0.000000e+00 : f32
    %19 = vector.broadcast %cst_10 : f32 to vector<1x1024xf32>
    %20 = arith.maximumf %18, %19 : vector<1x1024xf32>
    %cst_11 = arith.constant 9.99999974E-6 : f32
    %21 = vector.broadcast %cst_11 : f32 to vector<1x1024xf32>
    %22 = arith.addf %20, %21 : vector<1x1024xf32>
    %23 = math.rsqrt %22 : vector<1x1024xf32>
    %c0_12 = arith.constant 0 : index
    %c0_13 = arith.constant 0 : index
    %24 = vector.load %arg4[%c0_12, %c0_13] : memref<1x1024xf32, #tpu.memory_space<vmem>>, vector<1x1024xf32>
    %25 = arith.mulf %23, %24 : vector<1x1024xf32>
    %26 = vector.broadcast %25 : vector<1x1024xf32> to vector<8x1024xf32>
    %27 = arith.mulf %13, %26 : vector<8x1024xf32>
    %c0_14 = arith.constant 0 : index
    %c0_15 = arith.constant 0 : index
    %28 = vector.load %arg5[%c0_14, %c0_15] : memref<1x1024xf32, #tpu.memory_space<vmem>>, vector<1x1024xf32>
    %29 = vector.broadcast %28 : vector<1x1024xf32> to vector<8x1024xf32>
    %30 = arith.addf %27, %29 : vector<8x1024xf32>
    %31 = arith.truncf %30 : vector<8x1024xf32> to vector<8x1024xbf16>
    %c0_16 = arith.constant 0 : index
    %c0_17 = arith.constant 0 : index
    %32 = vector.load %arg6[%c0_16, %c0_17] : memref<1024x512xbf16, #tpu.memory_space<vmem>>, vector<1024x512xbf16>
    %cst_18 = arith.constant dense<0.000000e+00> : vector<8x512xf32>
    %33 = tpu.matmul %31, %32, %cst_18 {dimension_numbers = #tpu.dot_dimension_numbers<[1], [0], [0], [1], [0, 0, 1, 1], [], []>} : vector<8x1024xbf16>, vector<1024x512xbf16>, vector<8x512xf32> -> vector<8x512xf32>
    %c0_19 = arith.constant 0 : index
    %c0_20 = arith.constant 0 : index
    %34 = vector.load %arg7[%c0_19, %c0_20] : memref<1x512xf32, #tpu.memory_space<vmem>>, vector<1x512xf32>
    %35 = vector.broadcast %34 : vector<1x512xf32> to vector<8x512xf32>
    %36 = arith.addf %33, %35 : vector<8x512xf32>
    %cst_21 = arith.constant 0.000000e+00 : f32
    %37 = vector.broadcast %cst_21 : f32 to vector<8x512xf32>
    %38 = arith.maximumf %36, %37 : vector<8x512xf32>
    %39 = arith.truncf %38 : vector<8x512xf32> to vector<8x512xbf16>
    %c0_22 = arith.constant 0 : index
    %c0_23 = arith.constant 0 : index
    %40 = vector.load %arg8[%c0_22, %c0_23] : memref<512x128xbf16, #tpu.memory_space<vmem>>, vector<512x128xbf16>
    %cst_24 = arith.constant dense<0.000000e+00> : vector<8x128xf32>
    %41 = tpu.matmul %39, %40, %cst_24 {dimension_numbers = #tpu.dot_dimension_numbers<[1], [0], [0], [1], [0, 0, 1, 1], [], []>} : vector<8x512xbf16>, vector<512x128xbf16>, vector<8x128xf32> -> vector<8x128xf32>
    %c0_25 = arith.constant 0 : index
    %c0_26 = arith.constant 0 : index
    %42 = vector.load %arg9[%c0_25, %c0_26] : memref<1x128xf32, #tpu.memory_space<vmem>>, vector<1x128xf32>
    %43 = vector.broadcast %42 : vector<1x128xf32> to vector<8x128xf32>
    %44 = arith.addf %41, %43 : vector<8x128xf32>
    %45 = arith.negf %44 : vector<8x128xf32>
    %46 = math.exp %45 : vector<8x128xf32>
    %cst_27 = arith.constant 1.000000e+00 : f32
    %47 = vector.broadcast %cst_27 : f32 to vector<8x128xf32>
    %48 = arith.addf %47, %46 : vector<8x128xf32>
    %49 = arith.divf %47, %48 : vector<8x128xf32>
    %c0_28 = arith.constant 0 : index
    %c0_29 = arith.constant 0 : index
    %50 = vector.load %arg10[%c0_28, %c0_29] : memref<8x128xf32, #tpu.memory_space<vmem>>, vector<8x128xf32>
    tpu.vector_store %arg10[%c0_28, %c0_29], %49 {strides = array<i32>} : memref<8x128xf32, #tpu.memory_space<vmem>>, vector<8x128xf32>,
    return
  }
  func.func @transform_0(%arg0: i32) -> (i32, i32) {
    %c0_i32 = arith.constant 0 : i32
    %c0_i32_0 = arith.constant 0 : i32
    %c0_i32_1 = arith.constant 0 : i32
    return %c0_i32, %c0_i32_0 : i32, i32
  }
  func.func @transform_1(%arg0: i32) -> (i32, i32) {
    %c0_i32 = arith.constant 0 : i32
    %c0_i32_0 = arith.constant 0 : i32
    %c0_i32_1 = arith.constant 0 : i32
    return %c0_i32, %c0_i32_0 : i32, i32
  }
  func.func @transform_2(%arg0: i32) -> (i32, i32) {
    %c0_i32 = arith.constant 0 : i32
    %c0_i32_0 = arith.constant 0 : i32
    %c0_i32_1 = arith.constant 0 : i32
    return %c0_i32, %c0_i32_0 : i32, i32
  }
  func.func @transform_3(%arg0: i32) -> (i32, i32) {
    %c0_i32 = arith.constant 0 : i32
    %c0_i32_0 = arith.constant 0 : i32
    %c0_i32_1 = arith.constant 0 : i32
    return %c0_i32, %c0_i32_0 : i32, i32
  }
  func.func @transform_4(%arg0: i32) -> (i32, i32) {
    %c0_i32 = arith.constant 0 : i32
    %c0_i32_0 = arith.constant 0 : i32
    %c0_i32_1 = arith.constant 0 : i32
    return %c0_i32, %c0_i32_0 : i32, i32
  }
  func.func @transform_5(%arg0: i32) -> (i32, i32) {
    %c0_i32 = arith.constant 0 : i32
    %c0_i32_0 = arith.constant 0 : i32
    %c0_i32_1 = arith.constant 0 : i32
    return %c0_i32, %c0_i32_0 : i32, i32
  }
  func.func @transform_6(%arg0: i32) -> (i32, i32) {
    %c0_i32 = arith.constant 0 : i32
    %c0_i32_0 = arith.constant 0 : i32
    %c0_i32_1 = arith.constant 0 : i32
    return %c0_i32, %c0_i32_0 : i32, i32
  }
  func.func @transform_7(%arg0: i32) -> (i32, i32) {
    %c0_i32 = arith.constant 0 : i32
    %c0_i32_0 = arith.constant 0 : i32
    %c0_i32_1 = arith.constant 0 : i32
    return %c0_i32, %c0_i32_0 : i32, i32
  }
  func.func @transform_8(%arg0: i32) -> (i32, i32) {
    %c0_i32 = arith.constant 0 : i32
    %c0_i32_0 = arith.constant 0 : i32
    %c0_i32_1 = arith.constant 0 : i32
    return %c0_i32, %c0_i32_0 : i32, i32
  }
  func.func @transform_9(%arg0: i32) -> (i32, i32) {
    %c0_i32 = arith.constant 0 : i32
    %c0_i32_0 = arith.constant 0 : i32
    %c0_i32_1 = arith.constant 0 : i32
    return %c0_i32, %c0_i32_0 : i32, i32
  }
}

</mosaic_0001>

<bundles_post_ra>
// kernel: tpu_custom_call.1
= control target key start
LH: loop header
LB: loop body
LE: loop exit
PB: predicated region body
PF: predicated region fallthrough
CT: control target
= control target key end

     0   :  { %14 = vsyncpa [#allocation3], 0  ;;  %s5081_s0 = inlined_call_operand.hbm [shape: bf16[8,256], index: 0, kind: input, shape index: {}]   ;;  %s5082_s1 = inlined_call_operand.hbm [shape: bf16[256,1024], index: 1, kind: input, shape index: {}]   ;;  %s5083_s2 = inlined_call_operand.hbm [shape: f32[1,1024], index: 2, kind: input, shape index: {}]   ;;  %s5084_s3 = inlined_call_operand.vmem [shape: f32[1,1024], index: 3, kind: input, shape index: {}]   ;;  %s5085_s4 = inlined_call_operand.hbm [shape: f32[1,1024], index: 4, kind: input, shape index: {}]   ;;  %s5086_s5 = inlined_call_operand.hbm [shape: bf16[1024,512], index: 5, kind: input, shape index: {}]   ;;  %s5087_s6 = inlined_call_operand.vmem [shape: f32[1,512], index: 6, kind: input, shape index: {}]   ;;  %s5088_s7 = inlined_call_operand.hbm [shape: bf16[512,128], index: 7, kind: input, shape index: {}]   ;;  %s5089_s8 = inlined_call_operand.vmem [shape: f32[1,128], index: 8, kind: input, shape index: {}]   ;;  %s5090_s9 = inlined_call_operand.hbm [shape: f32[8,128], index: 9, kind: output, shape index: {}]  }
   0x1   :  { %15 = vsyncpa [#allocation6], 0 }
   0x2   :  { %16 = vsyncpa [#allocation9], 0 }
   0x3   :  { %17 = vsyncpa [#allocation12], 0 }
   0x4   :  { %18 = vsyncpa [#allocation4], 0  ;;  %s4771_s30 = smov [#allocation5]   ;;  %s4607_s13 = scalar_lea.hbm %s5082_s1, 16384 }
   0x5   :  { %s34_s10 = sshll.u32 %s4771_s30, 4  ;;  %p4608_p0 = scmp.ne.s32.totalorder %s5082_s1, %s4607_s13  ;;  %s35_s10 = int_to_ptr.vmem [resolvable:$true] %s34_s10 }
   0x6   :  { %p4611_p1 = scmp.lt.u32.totalorder %s4607_s13, %s5082_s1 }
   0x8   :  { %p4613_p2 = pnand %p4611_p1, %p4608_p0 }
   0xa   :  { %4616 = shalt.err (!%p4613_p2)
}
   0xb   :  { %s4617_s18 = scalar_lea.vmem %s35_s10, 16384  ;;  %p4622_p4 = scmp.lt.s32.totalorder %s35_s10, %s35_s10 }
   0xc   :  { %p4618_p3 = scmp.ne.s32.totalorder %s35_s10, %s4617_s18  ;;  %p4623_p5 = scmp.lt.s32.totalorder %s4617_s18, %s4617_s18 }
   0xe   :  { %p4624_p6 = por %p4623_p5, %p4622_p4 }
  0x10   :  { %p4625_p7 = pnand %p4624_p6, %p4618_p3 }
  0x12   :  { %4628 = shalt.err (!%p4625_p7)
}
  0x13   :  { %s4772_s19 = smov 512   ;;  %s4773_s20 = smov 32  }
  0x14   :  { %40 = dma.hbm_to_vmem [thread:$0]  %s5082_s1, 16384, %s35_s10, [#allocation6], %s4772_s19, %s4772_s19, %s4773_s20  }
  0x15   :  { %s4774_s23 = smov [#allocation8]   ;;  %s4775_s25 = smov [#allocation2]  }
  0x16   :  { %s59_s24 = sshll.u32 %s4774_s23, 4  ;;  %s25_s26 = sshll.u32 %s4775_s25, 4  ;;  %s60_s24 = int_to_ptr.vmem [resolvable:$true] %s59_s24  ;;  %s26_s26 = int_to_ptr.vmem [resolvable:$true] %s25_s26 }
  0x17   :  { %s4629_s29 = scalar_lea.hbm %s5085_s4, 128 }
  0x18   :  { %p4630_p8 = scmp.ne.s32.totalorder %s5085_s4, %s4629_s29  ;;  %p4633_p9 = scmp.lt.u32.totalorder %s4629_s29, %s5085_s4 }
  0x1a   :  { %p4635_p10 = pnand %p4633_p9, %p4630_p8 }
  0x1c   :  { %4638 = shalt.err (!%p4635_p10)
}
  0x1d   :  { %s4639_s1 = scalar_lea.vmem %s60_s24, 128  ;;  %p4644_p12 = scmp.lt.s32.totalorder %s60_s24, %s60_s24 }
  0x1e   :  { %p4640_p11 = scmp.ne.s32.totalorder %s60_s24, %s4639_s1  ;;  %p4645_p13 = scmp.lt.s32.totalorder %s4639_s1, %s4639_s1 }
  0x20   :  { %p4646_p0 = por %p4645_p13, %p4644_p12 }
  0x22   :  { %p4647_p1 = pnand %p4646_p0, %p4640_p11 }
  0x24   :  { %4650 = shalt.err (!%p4647_p1)
}
  0x25   :  { %62 = dma.hbm_to_vmem [thread:$0]  %s5085_s4, 128, %s60_s24, [#allocation9]  }
  0x26   :  { %s4651_s17 = scalar_lea.hbm %s5081_s0, 128 }
  0x27   :  { %p4652_p2 = scmp.ne.s32.totalorder %s5081_s0, %s4651_s17  ;;  %p4655_p3 = scmp.lt.u32.totalorder %s4651_s17, %s5081_s0 }
  0x29   :  { %p4657_p4 = pnand %p4655_p3, %p4652_p2 }
  0x2b   :  { %4660 = shalt.err (!%p4657_p4)
}
  0x2c   :  { %s4661_s22 = scalar_lea.vmem %s26_s26, 128  ;;  %p4666_p6 = scmp.lt.s32.totalorder %s26_s26, %s26_s26 }
  0x2d   :  { %p4662_p5 = scmp.ne.s32.totalorder %s26_s26, %s4661_s22  ;;  %p4667_p7 = scmp.lt.s32.totalorder %s4661_s22, %s4661_s22 }
  0x2f   :  { %p4668_p8 = por %p4667_p7, %p4666_p6 }
  0x31   :  { %p4669_p9 = pnand %p4668_p8, %p4662_p5 }
  0x33   :  { %4672 = shalt.err (!%p4669_p9)
}
  0x34   :  { %28 = dma.hbm_to_vmem [thread:$0]  %s5081_s0, 128, %s26_s26, [#allocation3]  }
  0x35   :  { %s4776_s24 = smov [#allocation7]   ;;  %s4777_s27 = smov [#allocation10]  }
  0x36   :  { %s47_s25 = sshll.u32 %s4776_s24, 4  ;;  %s68_s28 = sshll.u32 %s4777_s27, 4  ;;  %s48_s25 = int_to_ptr.vmem [resolvable:$true] %s47_s25  ;;  %s69_s28 = int_to_ptr.vmem [resolvable:$true] %s68_s28 }
  0x37   :  { %s4673_s11 = scalar_lea.hbm %s5083_s2, 128 }
  0x38   :  { %p4674_p10 = scmp.ne.s32.totalorder %s5083_s2, %s4673_s11  ;;  %p4677_p11 = scmp.lt.u32.totalorder %s4673_s11, %s5083_s2 }
  0x3a   :  { %p4679_p12 = pnand %p4677_p11, %p4674_p10 }
  0x3c   :  { %4682 = shalt.err (!%p4679_p12)
}
  0x3d   :  { %s4683_s0 = scalar_lea.vmem %s48_s25, 128  ;;  %p4688_p0 = scmp.lt.s32.totalorder %s48_s25, %s48_s25 }
  0x3e   :  { %p4684_p13 = scmp.ne.s32.totalorder %s48_s25, %s4683_s0  ;;  %p4689_p1 = scmp.lt.s32.totalorder %s4683_s0, %s4683_s0 }
  0x40   :  { %p4690_p2 = por %p4689_p1, %p4688_p0 }
  0x42   :  { %p4691_p3 = pnand %p4690_p2, %p4684_p13 }
  0x44   :  { %4694 = shalt.err (!%p4691_p3)
}
  0x45   :  { %50 = dma.hbm_to_vmem [thread:$0]  %s5083_s2, 128, %s48_s25, [#allocation6]  }
  0x46   :  { %s4695_s17 = scalar_lea.hbm %s5086_s5, 32768 }
  0x47   :  { %p4696_p4 = scmp.ne.s32.totalorder %s5086_s5, %s4695_s17  ;;  %p4699_p5 = scmp.lt.u32.totalorder %s4695_s17, %s5086_s5 }
  0x49   :  { %p4701_p6 = pnand %p4699_p5, %p4696_p4 }
  0x4b   :  { %4704 = shalt.err (!%p4701_p6)
}
  0x4c   :  { %s4705_s22 = scalar_lea.vmem %s69_s28, 32768  ;;  %p4710_p8 = scmp.lt.s32.totalorder %s69_s28, %s69_s28 }
  0x4d   :  { %p4706_p7 = scmp.ne.s32.totalorder %s69_s28, %s4705_s22  ;;  %p4711_p9 = scmp.lt.s32.totalorder %s4705_s22, %s4705_s22 }
  0x4f   :  { %p4712_p10 = por %p4711_p9, %p4710_p8 }
  0x51   :  { %p4713_p11 = pnand %p4712_p10, %p4706_p7 }
  0x53   :  { %4716 = shalt.err (!%p4713_p11)
}
  0x54   :  { %s4778_s2 = smov 256   ;;  %s4779_s4 = smov 16  }
  0x55   :  { %74 = dma.hbm_to_vmem [thread:$0]  %s5086_s5, 32768, %s69_s28, [#allocation9], %s4778_s2, %s4778_s2, %s4779_s4  }
  0x56   :  { %s4780_s25 = smov [#allocation11]   ;;  %s4717_s11 = scalar_lea.hbm %s5088_s7, 4096 }
  0x57   :  { %s82_s27 = sshll.u32 %s4780_s25, 4  ;;  %p4718_p12 = scmp.ne.s32.totalorder %s5088_s7, %s4717_s11  ;;  %s83_s27 = int_to_ptr.vmem [resolvable:$true] %s82_s27 }
  0x58   :  { %p4721_p13 = scmp.lt.u32.totalorder %s4717_s11, %s5088_s7 }
  0x5a   :  { %p4723_p0 = pnand %p4721_p13, %p4718_p12 }
  0x5c   :  { %4726 = shalt.err (!%p4723_p0)
}
  0x5d   :  { %s4727_s0 = scalar_lea.vmem %s83_s27, 4096  ;;  %p4732_p2 = scmp.lt.s32.totalorder %s83_s27, %s83_s27 }
  0x5e   :  { %p4728_p1 = scmp.ne.s32.totalorder %s83_s27, %s4727_s0  ;;  %p4733_p3 = scmp.lt.s32.totalorder %s4727_s0, %s4727_s0 }
  0x60   :  { %p4734_p4 = por %p4733_p3, %p4732_p2 }
  0x62   :  { %p4735_p5 = pnand %p4734_p4, %p4728_p1 }
  0x64   :  { %4738 = shalt.err (!%p4735_p5)
}
  0x65   :  { %s4781_s5 = smov 64   ;;  %s4782_s28 = smov 4  }
  0x66   :  { %88 = dma.hbm_to_vmem [thread:$0]  %s5088_s7, 4096, %s83_s27, [#allocation12], %s4781_s5, %s4781_s5, %s4782_s28  }
  0x67   :  { %4761 = dma.done.wait [#allocation3], 128  }
  0x68   :  { %4762 = vsyncadd [#allocation3], 4294967168 }
  0x69   :  { %4763 = dma.done.wait [#allocation6], 16512  }
  0x6a   :  { %4764 = vsyncadd [#allocation6], 4294950784 }
  0x6b   :  { %4765 = dma.done.wait [#allocation9], 32896  }
  0x6c   :  { %4766 = vsyncadd [#allocation9], 4294934400 }
  0x6d   :  { %4767 = dma.done.wait [#allocation12], 4096  }
  0x6e   :  { %4768 = vsyncadd [#allocation12], 4294963200  ;;  %v111_v0 = vld [vmem:[#allocation5] sm:$0xff]  ;;  %v112_v9 = vld [vmem:[#allocation5 + $0x8] sm:$0xff]  ;;  %s4783_s20 = smov [#allocation13]  }
  0x6f   :  { %v115_v1 = vld [vmem:[#allocation5 + $0x20] sm:$0xff]  ;;  %v116_v10 = vld [vmem:[#allocation5 + $0x28] sm:$0xff]  ;;  %v4906_v47 = vld [vmem:[#allocation2] sm:$0xff]  ;;  %s3650_s21 = sshll.u32 %s4783_s20, 4  ;;  %s3651_s21 = int_to_ptr.vmem [resolvable:$true] %s3650_s21 }
  0x70   :  { %v119_v2 = vld [vmem:[#allocation5 + $0x40] sm:$0xff]  ;;  %v3665_v3 = vcombine.high %v111_v0, %v115_v1  ;;  %v3664_v4 = vcombine.low %v111_v0, %v115_v1  ;;  %v3667_v12 = vcombine.high %v112_v9, %v116_v10  ;;  %v3666_v13 = vcombine.low %v112_v9, %v116_v10  ;;  %v120_v14 = vld [vmem:[#allocation5 + $0x48] sm:$0xff]  ;;  %p4744_p7 = scmp.lt.s32.totalorder %s3651_s21, %s3651_s21 }
  0x71   :  { %v123_v5 = vld [vmem:[#allocation5 + $0x60] sm:$0xff]  ;;  %v124_v15 = vld [vmem:[#allocation5 + $0x68] sm:$0xff]  ;;  %v4910_v50 = vcombine.high %v4906_v47, %v4906_v47 }
  0x72   :  { %v3673_v6 = vcombine.high %v119_v2, %v123_v5  ;;  %v127_v7 = vld [vmem:[#allocation5 + $0x80] sm:$0xff]  ;;  %928 = vmatprep.subr.bf16.mxu0 %v3665_v3  ;;  %v3672_v11 = vcombine.low %v119_v2, %v123_v5  ;;  %v3675_v17 = vcombine.high %v120_v14, %v124_v15  ;;  %v128_v18 = vld [vmem:[#allocation5 + $0x88] sm:$0xff]  ;;  %969 = vmatprep.subr.bf16.mxu1 %v3667_v12 }
  0x73   :  { %v131_v8 = vld [vmem:[#allocation5 + $0xa0] sm:$0xff]  ;;  %929 = vmatpush1.bf16.msra.mxu0 %v3664_v4  ;;  %v132_v19 = vld [vmem:[#allocation5 + $0xa8] sm:$0xff]  ;;  %970 = vmatpush1.bf16.msra.mxu1 %v3666_v13  ;;  %v3674_v22 = vcombine.low %v120_v14, %v124_v15 }
  0x74   :  { %930 = vmatprep.subr.bf16.mxu0 %v3673_v6  ;;  %v3681_v16 = vcombine.high %v127_v7, %v131_v8  ;;  %v135_v20 = vld [vmem:[#allocation5 + $0xc0] sm:$0xff]  ;;  %v3680_v23 = vcombine.low %v127_v7, %v131_v8  ;;  %971 = vmatprep.subr.bf16.mxu1 %v3675_v17  ;;  %v3683_v24 = vcombine.high %v128_v18, %v132_v19  ;;  %v136_v26 = vld [vmem:[#allocation5 + $0xc8] sm:$0xff] }
  0x75   :  { %v139_v21 = vld [vmem:[#allocation5 + $0xe0] sm:$0xff]  ;;  %v140_v27 = vld [vmem:[#allocation5 + $0xe8] sm:$0xff]  ;;  %v3682_v30 = vcombine.low %v128_v18, %v132_v19  ;;  %960 = vmatprep.mubr.bf16.mxu0 %v4910_v50  ;;  %1001 = vmatprep.mubr.bf16.mxu1 %v4910_v50 }
  0x76   :  { %v3689_v25 = vcombine.high %v135_v20, %v139_v21  ;;  %v143_v28 = vld [vmem:[#allocation5 + $0x100] sm:$0xff]  ;;  %v3688_v31 = vcombine.low %v135_v20, %v139_v21  ;;  %v3691_v32 = vcombine.high %v136_v26, %v140_v27  ;;  %v144_v34 = vld [vmem:[#allocation5 + $0x108] sm:$0xff]  ;;  %v3690_v38 = vcombine.low %v136_v26, %v140_v27 }
  0x77   :  { %931 = vmatpush1.bf16.msra.mxu0 %v3672_v11  ;;  %v147_v29 = vld [vmem:[#allocation5 + $0x120] sm:$0xff]  ;;  %972 = vmatpush1.bf16.msra.mxu1 %v3674_v22  ;;  %v148_v35 = vld [vmem:[#allocation5 + $0x128] sm:$0xff] }
  0x78   :  { %932 = vmatprep.subr.bf16.mxu0 %v3681_v16  ;;  %973 = vmatprep.subr.bf16.mxu1 %v3683_v24  ;;  %v3697_v33 = vcombine.high %v143_v28, %v147_v29  ;;  %v151_v36 = vld [vmem:[#allocation5 + $0x140] sm:$0xff]  ;;  %v3696_v39 = vcombine.low %v143_v28, %v147_v29  ;;  %v3699_v40 = vcombine.high %v144_v34, %v148_v35  ;;  %v152_v42 = vld [vmem:[#allocation5 + $0x148] sm:$0xff] }
  0x79   :  { %v155_v37 = vld [vmem:[#allocation5 + $0x160] sm:$0xff]  ;;  %v156_v43 = vld [vmem:[#allocation5 + $0x168] sm:$0xff]  ;;  %v3698_v46 = vcombine.low %v144_v34, %v148_v35 }
  0x7a   :  { %v3705_v41 = vcombine.high %v151_v36, %v155_v37  ;;  %v159_v44 = vld [vmem:[#allocation5 + $0x180] sm:$0xff]  ;;  %v3704_v48 = vcombine.low %v151_v36, %v155_v37  ;;  %v3707_v49 = vcombine.high %v152_v42, %v156_v43  ;;  %v160_v52 = vld [vmem:[#allocation5 + $0x188] sm:$0xff]  ;;  %v3706_v56 = vcombine.low %v152_v42, %v156_v43 }
  0x7b   :  { %933 = vmatpush1.bf16.msra.mxu0 %v3680_v23  ;;  %974 = vmatpush1.bf16.msra.mxu1 %v3682_v30  ;;  %v163_v45 = vld [vmem:[#allocation5 + $0x1a0] sm:$0xff]  ;;  %v164_v53 = vld [vmem:[#allocation5 + $0x1a8] sm:$0xff] }
  0x7c   :  { %934 = vmatprep.subr.bf16.mxu0 %v3689_v25  ;;  %975 = vmatprep.subr.bf16.mxu1 %v3691_v32  ;;  %v3713_v51 = vcombine.high %v159_v44, %v163_v45  ;;  %v167_v54 = vld [vmem:[#allocation5 + $0x1c0] sm:$0xff]  ;;  %v3712_v57 = vcombine.low %v159_v44, %v163_v45  ;;  %v3715_v58 = vcombine.high %v160_v52, %v164_v53  ;;  %v168_v60 = vld [vmem:[#allocation5 + $0x1c8] sm:$0xff] }
  0x7d   :  { %v171_v55 = vld [vmem:[#allocation5 + $0x1e0] sm:$0xff]  ;;  %v172_v61 = vld [vmem:[#allocation5 + $0x1e8] sm:$0xff]  ;;  %v3714_v0 = vcombine.low %v160_v52, %v164_v53 }
  0x7e   :  { %v3721_v59 = vcombine.high %v167_v54, %v171_v55  ;;  %v175_v62 = vld [vmem:[#allocation5 + $0x200] sm:$0xff]  ;;  %v3720_v1 = vcombine.low %v167_v54, %v171_v55  ;;  %v3723_v2 = vcombine.high %v168_v60, %v172_v61  ;;  %v176_v4 = vld [vmem:[#allocation5 + $0x208] sm:$0xff]  ;;  %v3722_v8 = vcombine.low %v168_v60, %v172_v61 }
  0x7f   :  { %935 = vmatpush1.bf16.msra.mxu0 %v3688_v31  ;;  %976 = vmatpush1.bf16.msra.mxu1 %v3690_v38  ;;  %v179_v63 = vld [vmem:[#allocation5 + $0x220] sm:$0xff]  ;;  %v180_v5 = vld [vmem:[#allocation5 + $0x228] sm:$0xff] }
  0x80   :  { %936 = vmatprep.subr.bf16.mxu0 %v3697_v33  ;;  %977 = vmatprep.subr.bf16.mxu1 %v3699_v40  ;;  %v3729_v3 = vcombine.high %v175_v62, %v179_v63  ;;  %v183_v6 = vld [vmem:[#allocation5 + $0x240] sm:$0xff]  ;;  %v3728_v9 = vcombine.low %v175_v62, %v179_v63  ;;  %v3731_v10 = vcombine.high %v176_v4, %v180_v5  ;;  %v184_v12 = vld [vmem:[#allocation5 + $0x248] sm:$0xff]  ;;  %v113_v63 = vld [vmem:[#allocation5 + $0x10] sm:$0xff] }
  0x81   :  { %v187_v7 = vld [vmem:[#allocation5 + $0x260] sm:$0xff]  ;;  %v188_v13 = vld [vmem:[#allocation5 + $0x268] sm:$0xff]  ;;  %v3730_v16 = vcombine.low %v176_v4, %v180_v5  ;;  %v121_v5 = vld [vmem:[#allocation5 + $0x50] sm:$0xff] }
  0x82   :  { %v3737_v11 = vcombine.high %v183_v6, %v187_v7  ;;  %v191_v14 = vld [vmem:[#allocation5 + $0x280] sm:$0xff]  ;;  %v3736_v17 = vcombine.low %v183_v6, %v187_v7  ;;  %v3739_v18 = vcombine.high %v184_v12, %v188_v13  ;;  %v192_v20 = vld [vmem:[#allocation5 + $0x288] sm:$0xff]  ;;  %v3738_v24 = vcombine.low %v184_v12, %v188_v13  ;;  %v125_v6 = vld [vmem:[#allocation5 + $0x70] sm:$0xff] }
  0x83   :  { %937 = vmatpush1.bf16.msra.mxu0 %v3696_v39  ;;  %978 = vmatpush1.bf16.msra.mxu1 %v3698_v46  ;;  %v195_v15 = vld [vmem:[#allocation5 + $0x2a0] sm:$0xff]  ;;  %v196_v21 = vld [vmem:[#allocation5 + $0x2a8] sm:$0xff]  ;;  %v114_v7 = vld [vmem:[#allocation5 + $0x18] sm:$0xff] }
  0x84   :  { %938 = vmatprep.subr.bf16.mxu0 %v3705_v41  ;;  %979 = vmatprep.subr.bf16.mxu1 %v3707_v49  ;;  %v3745_v19 = vcombine.high %v191_v14, %v195_v15  ;;  %v199_v22 = vld [vmem:[#allocation5 + $0x2c0] sm:$0xff]  ;;  %v3744_v25 = vcombine.low %v191_v14, %v195_v15  ;;  %v3747_v26 = vcombine.high %v192_v20, %v196_v21  ;;  %v200_v28 = vld [vmem:[#allocation5 + $0x2c8] sm:$0xff]  ;;  %v122_v12 = vld [vmem:[#allocation5 + $0x58] sm:$0xff] }
  0x85   :  { %v203_v23 = vld [vmem:[#allocation5 + $0x2e0] sm:$0xff]  ;;  %v204_v29 = vld [vmem:[#allocation5 + $0x2e8] sm:$0xff]  ;;  %v3746_v32 = vcombine.low %v192_v20, %v196_v21  ;;  %v126_v13 = vld [vmem:[#allocation5 + $0x78] sm:$0xff] }
  0x86   :  { %v3753_v27 = vcombine.high %v199_v22, %v203_v23  ;;  %v207_v30 = vld [vmem:[#allocation5 + $0x300] sm:$0xff]  ;;  %v3752_v33 = vcombine.low %v199_v22, %v203_v23  ;;  %v3755_v35 = vcombine.high %v200_v28, %v204_v29  ;;  %v208_v38 = vld [vmem:[#allocation5 + $0x308] sm:$0xff]  ;;  %v3754_v40 = vcombine.low %v200_v28, %v204_v29  ;;  %v129_v15 = vld [vmem:[#allocation5 + $0x90] sm:$0xff] }
  0x87   :  { %939 = vmatpush1.bf16.msra.mxu0 %v3704_v48  ;;  %980 = vmatpush1.bf16.msra.mxu1 %v3706_v56  ;;  %v211_v31 = vld [vmem:[#allocation5 + $0x320] sm:$0xff]  ;;  %v212_v39 = vld [vmem:[#allocation5 + $0x328] sm:$0xff]  ;;  %v130_v20 = vld [vmem:[#allocation5 + $0x98] sm:$0xff] }
  0x88   :  { %940 = vmatprep.subr.bf16.mxu0 %v3713_v51  ;;  %981 = vmatprep.subr.bf16.mxu1 %v3715_v58  ;;  %v215_v34 = vld [vmem:[#allocation5 + $0x340] sm:$0xff]  ;;  %v3761_v36 = vcombine.high %v207_v30, %v211_v31  ;;  %v216_v41 = vld [vmem:[#allocation5 + $0x348] sm:$0xff]  ;;  %v3760_v43 = vcombine.low %v207_v30, %v211_v31  ;;  %v3763_v46 = vcombine.high %v208_v38, %v212_v39  ;;  %v134_v21 = vld [vmem:[#allocation5 + $0xb8] sm:$0xff] }
  0x89   :  { %v219_v37 = vld [vmem:[#allocation5 + $0x360] sm:$0xff]  ;;  %v220_v42 = vld [vmem:[#allocation5 + $0x368] sm:$0xff]  ;;  %v3762_v49 = vcombine.low %v208_v38, %v212_v39  ;;  %v137_v22 = vld [vmem:[#allocation5 + $0xd0] sm:$0xff] }
  0x8a   :  { %v223_v44 = vld [vmem:[#allocation5 + $0x380] sm:$0xff]  ;;  %v3769_v48 = vcombine.high %v215_v34, %v219_v37  ;;  %v224_v51 = vld [vmem:[#allocation5 + $0x388] sm:$0xff]  ;;  %v3768_v53 = vcombine.low %v215_v34, %v219_v37  ;;  %v3771_v56 = vcombine.high %v216_v41, %v220_v42  ;;  %v3770_v58 = vcombine.low %v216_v41, %v220_v42  ;;  %v141_v23 = vld [vmem:[#allocation5 + $0xf0] sm:$0xff] }
  0x8b   :  { %941 = vmatpush1.bf16.msra.mxu0 %v3712_v57  ;;  %982 = vmatpush1.bf16.msra.mxu1 %v3714_v0  ;;  %v227_v45 = vld [vmem:[#allocation5 + $0x3a0] sm:$0xff]  ;;  %v228_v52 = vld [vmem:[#allocation5 + $0x3a8] sm:$0xff]  ;;  %v117_v0 = vld [vmem:[#allocation5 + $0x30] sm:$0xff]  ;;  %v3686_v34 = vcombine.low %v130_v20, %v134_v21  ;;  %v3692_v37 = vcombine.low %v137_v22, %v141_v23 }
  0x8c   :  { %942 = vmatprep.subr.bf16.mxu0 %v3721_v59  ;;  %983 = vmatprep.subr.bf16.mxu1 %v3723_v2  ;;  %v231_v54 = vld [vmem:[#allocation5 + $0x3c0] sm:$0xff]  ;;  %v3777_v57 = vcombine.high %v223_v44, %v227_v45  ;;  %v232_v59 = vld [vmem:[#allocation5 + $0x3c8] sm:$0xff]  ;;  %v3776_v61 = vcombine.low %v223_v44, %v227_v45  ;;  %v3779_v62 = vcombine.high %v224_v51, %v228_v52  ;;  %v142_v28 = vld [vmem:[#allocation5 + $0xf8] sm:$0xff] }
  0x8d   :  { %v235_v55 = vld [vmem:[#allocation5 + $0x3e0] sm:$0xff]  ;;  %v236_v60 = vld [vmem:[#allocation5 + $0x3e8] sm:$0xff]  ;;  %v3778_v2 = vcombine.low %v224_v51, %v228_v52  ;;  %v3668_v14 = vcombine.low %v113_v63, %v117_v0  ;;  %v145_v30 = vld [vmem:[#allocation5 + $0x110] sm:$0xff] }
  0x8e   :  { %v3787_v4 = vcombine.high %v232_v59, %v236_v60  ;;  %v149_v31 = vld [vmem:[#allocation5 + $0x130] sm:$0xff]  ;;  %v154_v42 = vld [vmem:[#allocation5 + $0x158] sm:$0xff] }
  0x8f   :  { %943 = vmatpush1.bf16.msra.mxu0 %v3720_v1  ;;  %984 = vmatpush1.bf16.msra.mxu1 %v3722_v8  ;;  %v3785_v1 = vcombine.high %v231_v54, %v235_v55  ;;  %v118_v8 = vld [vmem:[#allocation5 + $0x38] sm:$0xff]  ;;  %v153_v38 = vld [vmem:[#allocation5 + $0x150] sm:$0xff]  ;;  %v3700_v44 = vcombine.low %v145_v30, %v149_v31 }
  0x90   :  { %944 = vmatprep.subr.bf16.mxu0 %v3729_v3  ;;  %985 = vmatprep.subr.bf16.mxu1 %v3731_v10  ;;  %v3784_v3 = vcombine.low %v231_v54, %v235_v55  ;;  %v4916_v10 = vcombine.low %v4906_v47, %v4906_v47  ;;  %v3676_v47 = vcombine.low %v121_v5, %v125_v6  ;;  %v157_v39 = vld [vmem:[#allocation5 + $0x170] sm:$0xff]  ;;  %v162_v52 = vld [vmem:[#allocation5 + $0x198] sm:$0xff] }
  0x91   :  { %v161_v45 = vld [vmem:[#allocation5 + $0x190] sm:$0xff]  ;;  %v3708_v54 = vcombine.low %v153_v38, %v157_v39 }
  0x92   :  { %v169_v55 = vld [vmem:[#allocation5 + $0x1d0] sm:$0xff] }
  0x93   :  { %945 = vmatpush1.bf16.msra.mxu0 %v3728_v9  ;;  %986 = vmatpush1.bf16.msra.mxu1 %v3730_v16  ;;  %v3669_v9 = vcombine.high %v113_v63, %v117_v0  ;;  %v133_v16 = vld [vmem:[#allocation5 + $0xb0] sm:$0xff] }
  0x94   :  { %946 = vmatprep.subr.bf16.mxu0 %v3737_v11  ;;  %987 = vmatprep.subr.bf16.mxu1 %v3739_v18  ;;  %v3786_v11 = vcombine.low %v232_v59, %v236_v60  ;;  %v3671_v18 = vcombine.high %v114_v7, %v118_v8  ;;  %v3684_v29 = vcombine.low %v129_v15, %v133_v16  ;;  %v170_v60 = vld [vmem:[#allocation5 + $0x1d8] sm:$0xff]  ;;  %v177_v63 = vld [vmem:[#allocation5 + $0x210] sm:$0xff] }
  0x95   :  { %v181_v0 = vld [vmem:[#allocation5 + $0x230] sm:$0xff] }
  0x97   :  { %947 = vmatpush1.bf16.msra.mxu0 %v3736_v17  ;;  %988 = vmatpush1.bf16.msra.mxu1 %v3738_v24  ;;  %v3677_v17 = vcombine.high %v121_v5, %v125_v6  ;;  %v3679_v24 = vcombine.high %v122_v12, %v126_v13  ;;  %v182_v5 = vld [vmem:[#allocation5 + $0x238] sm:$0xff] }
  0x98   :  { %948 = vmatprep.subr.bf16.mxu0 %v3745_v19  ;;  %989 = vmatprep.subr.bf16.mxu1 %v3747_v26  ;;  %v3670_v19 = vcombine.low %v114_v7, %v118_v8  ;;  %v3678_v26 = vcombine.low %v122_v12, %v126_v13  ;;  %v185_v7 = vld [vmem:[#allocation5 + $0x250] sm:$0xff]  ;;  %v186_v13 = vld [vmem:[#allocation5 + $0x258] sm:$0xff] }
  0x99   :  { %v189_v8 = vld [vmem:[#allocation5 + $0x270] sm:$0xff] }
  0x9b   :  { %949 = vmatpush1.bf16.msra.mxu0 %v3744_v25  ;;  %990 = vmatpush1.bf16.msra.mxu1 %v3746_v32  ;;  %v3685_v25 = vcombine.high %v129_v15, %v133_v16  ;;  %v3687_v32 = vcombine.high %v130_v20, %v134_v21  ;;  %v3732_v15 = vcombine.low %v177_v63, %v181_v0  ;;  %v193_v16 = vld [vmem:[#allocation5 + $0x290] sm:$0xff]  ;;  %v194_v21 = vld [vmem:[#allocation5 + $0x298] sm:$0xff] }
  0x9c   :  { %950 = vmatprep.subr.bf16.mxu0 %v3753_v27  ;;  %991 = vmatprep.subr.bf16.mxu1 %v3755_v35  ;;  %v138_v27 = vld [vmem:[#allocation5 + $0xd8] sm:$0xff] }
  0x9d   :  { %v146_v35 = vld [vmem:[#allocation5 + $0x118] sm:$0xff]  ;;  %v3694_v41 = vcombine.low %v138_v27, %v142_v28 }
  0x9f   :  { %951 = vmatpush1.bf16.msra.mxu0 %v3752_v33  ;;  %992 = vmatpush1.bf16.msra.mxu1 %v3754_v40  ;;  %v3693_v33 = vcombine.high %v137_v22, %v141_v23  ;;  %v3695_v40 = vcombine.high %v138_v27, %v142_v28  ;;  %v3740_v22 = vcombine.low %v185_v7, %v189_v8  ;;  %v201_v23 = vld [vmem:[#allocation5 + $0x2d0] sm:$0xff]  ;;  %v202_v28 = vld [vmem:[#allocation5 + $0x2d8] sm:$0xff] }
  0xa0   :  { %952 = vmatprep.subr.bf16.mxu0 %v3761_v36  ;;  %993 = vmatprep.subr.bf16.mxu1 %v3763_v46  ;;  %v150_v36 = vld [vmem:[#allocation5 + $0x138] sm:$0xff]  ;;  %v165_v46 = vld [vmem:[#allocation5 + $0x1b0] sm:$0xff] }
  0xa1   :  { %v3702_v51 = vcombine.low %v146_v35, %v150_v36 }
  0xa3   :  { %953 = vmatpush1.bf16.msra.mxu0 %v3760_v43  ;;  %994 = vmatpush1.bf16.msra.mxu1 %v3762_v49  ;;  %v158_v43 = vld [vmem:[#allocation5 + $0x178] sm:$0xff]  ;;  %v3709_v49 = vcombine.high %v153_v38, %v157_v39  ;;  %v217_v39 = vld [vmem:[#allocation5 + $0x350] sm:$0xff] }
  0xa4   :  { %954 = vmatprep.subr.bf16.mxu0 %v3769_v48  ;;  %995 = vmatprep.subr.bf16.mxu1 %v3771_v56  ;;  %v3703_v48 = vcombine.high %v146_v35, %v150_v36  ;;  %v173_v56 = vld [vmem:[#allocation5 + $0x1f0] sm:$0xff]  ;;  %v3710_v59 = vcombine.low %v154_v42, %v158_v43  ;;  %v210_v36 = vld [vmem:[#allocation5 + $0x318] sm:$0xff] }
  0xa5   :  { %v3724_v6 = vcombine.low %v169_v55, %v173_v56 }
  0xa7   :  { %955 = vmatpush1.bf16.msra.mxu0 %v3768_v53  ;;  %996 = vmatpush1.bf16.msra.mxu1 %v3770_v58  ;;  %v166_v53 = vld [vmem:[#allocation5 + $0x1b8] sm:$0xff]  ;;  %v3717_v58 = vcombine.high %v161_v45, %v165_v46 }
  0xa8   :  { %956 = vmatprep.subr.bf16.mxu0 %v3777_v57  ;;  %997 = vmatprep.subr.bf16.mxu1 %v3779_v62  ;;  %v3711_v57 = vcombine.high %v154_v42, %v158_v43  ;;  %v3716_v62 = vcombine.low %v161_v45, %v165_v46  ;;  %v218_v43 = vld [vmem:[#allocation5 + $0x358] sm:$0xff]  ;;  %v225_v46 = vld [vmem:[#allocation5 + $0x390] sm:$0xff] }
  0xab   :  { %957 = vmatpush1.bf16.msra.mxu0 %v3776_v61  ;;  %998 = vmatpush1.bf16.msra.mxu1 %v3778_v2  ;;  %v174_v61 = vld [vmem:[#allocation5 + $0x1f8] sm:$0xff]  ;;  %v3725_v2 = vcombine.high %v169_v55, %v173_v56  ;;  %v233_v56 = vld [vmem:[#allocation5 + $0x3d0] sm:$0xff] }
  0xac   :  { %958 = vmatprep.subr.bf16.mxu0 %v3785_v1  ;;  %999 = vmatprep.subr.bf16.mxu1 %v3787_v4  ;;  %v3719_v1 = vcombine.high %v162_v52, %v166_v53  ;;  %v178_v4 = vld [vmem:[#allocation5 + $0x218] sm:$0xff]  ;;  %v3726_v12 = vcombine.low %v170_v60, %v174_v61 }
  0xad   :  { %v3734_v20 = vcombine.low %v178_v4, %v182_v5 }
  0xaf   :  { %959 = vmatpush1.bf16.msra.mxu0 %v3784_v3  ;;  %1000 = vmatpush1.bf16.msra.mxu1 %v3786_v11  ;;  %v3718_v3 = vcombine.low %v162_v52, %v166_v53  ;;  %v3733_v11 = vcombine.high %v177_v63, %v181_v0  ;;  %v226_v53 = vld [vmem:[#allocation5 + $0x398] sm:$0xff] }
  0xb0   :  { %1010 = vmatprep.subr.bf16.mxu0 %v3669_v9  ;;  %1051 = vmatprep.subr.bf16.mxu1 %v3671_v18  ;;  %v3727_v9 = vcombine.high %v170_v60, %v174_v61  ;;  %v3735_v18 = vcombine.high %v178_v4, %v182_v5  ;;  %v234_v61 = vld [vmem:[#allocation5 + $0x3d8] sm:$0xff] }
  0xb2   :  { %961 = vmatmul.mubr.bf16.vlgmr.msra.gmra.mrb[0].mxu0 %v4916_v10  ;;  %1002 = vmatmul.mubr.bf16.vlgmr.msra.gmra.mrb[0].mxu1 %v4916_v10 }
  0xb3   :  { %1011 = vmatpush1.bf16.msra.mxu0 %v3668_v14  ;;  %1042 = vmatprep.mubr.bf16.mxu0 %v4910_v50  ;;  %v190_v14 = vld [vmem:[#allocation5 + $0x278] sm:$0xff] }
  0xb4   :  { %1012 = vmatprep.subr.bf16.mxu0 %v3677_v17  ;;  %1052 = vmatpush1.bf16.msra.mxu1 %v3670_v19  ;;  %v197_v17 = vld [vmem:[#allocation5 + $0x2b0] sm:$0xff]  ;;  %v3741_v19 = vcombine.high %v185_v7, %v189_v8  ;;  %v3742_v27 = vcombine.low %v186_v13, %v190_v14  ;;  %v4174_v7 = vld [vmem:[#allocation10 + $0xc] ss:$16 sps:$4 sm:$0xff]  }
  0xb5   :  { %1083 = vmatprep.mubr.bf16.mxu1 %v4910_v50  ;;  %1053 = vmatprep.subr.bf16.mxu1 %v3679_v24  ;;  %v3701_v50 = vcombine.high %v145_v30, %v149_v31  ;;  %v205_v24 = vld [vmem:[#allocation5 + $0x2f0] sm:$0xff]  ;;  %v3748_v30 = vcombine.low %v193_v16, %v197_v17 }
  0xb6   :  { %v209_v31 = vld [vmem:[#allocation5 + $0x310] sm:$0xff]  ;;  %v3756_v38 = vcombine.low %v201_v23, %v205_v24 }
  0xb7   :  { %1013 = vmatpush1.bf16.msra.mxu0 %v3676_v47  ;;  %v198_v47 = vld [vmem:[#allocation5 + $0x2b8] sm:$0xff] }
  0xb8   :  { %1014 = vmatprep.subr.bf16.mxu0 %v3685_v25  ;;  %1054 = vmatpush1.bf16.msra.mxu1 %v3678_v26  ;;  %v3743_v25 = vcombine.high %v186_v13, %v190_v14  ;;  %v3749_v26 = vcombine.high %v193_v16, %v197_v17  ;;  %v3750_v35 = vcombine.low %v194_v21, %v198_v47  ;;  %v4175_v13 = vld [vmem:[#allocation10 + $0x20] ss:$16 sps:$4 sm:$0xff]   ;;  %v4178_v14 = vld [vmem:[#allocation10 + $0x28] ss:$16 sps:$4 sm:$0xff]   ;;  %v4186_v16 = vld [vmem:[#allocation10 + $0x4c] ss:$16 sps:$4 sm:$0xff]  }
  0xb9   :  { %1055 = vmatprep.subr.bf16.mxu1 %v3687_v32  ;;  %v213_v32 = vld [vmem:[#allocation5 + $0x330] sm:$0xff] }
  0xba   :  { %v3764_v45 = vcombine.low %v209_v31, %v213_v32  ;;  %v4181_v17 = vld [vmem:[#allocation10 + $0x40] ss:$16 sps:$4 sm:$0xff]  }
  0xbb   :  { %1015 = vmatpush1.bf16.msra.mxu0 %v3684_v29  ;;  %v206_v29 = vld [vmem:[#allocation5 + $0x2f8] sm:$0xff] }
  0xbc   :  { %1016 = vmatprep.subr.bf16.mxu0 %v3693_v33  ;;  %1056 = vmatpush1.bf16.msra.mxu1 %v3686_v34  ;;  %v3751_v33 = vcombine.high %v194_v21, %v198_v47  ;;  %v3757_v34 = vcombine.high %v201_v23, %v205_v24  ;;  %v3758_v42 = vcombine.low %v202_v28, %v206_v29  ;;  %v4190_v21 = vld [vmem:[#allocation10 + $0x68] ss:$16 sps:$4 sm:$0xff]   ;;  %v4195_v47 = vld [vmem:[#allocation10 + $0x84] ss:$16 sps:$4 sm:$0xff]   ;;  %v4193_v23 = vld [vmem:[#allocation10 + $0x80] ss:$16 sps:$4 sm:$0xff]  }
  0xbd   :  { %1057 = vmatprep.subr.bf16.mxu1 %v3695_v40  ;;  %v221_v40 = vld [vmem:[#allocation5 + $0x370] sm:$0xff]  ;;  %v4196_v24 = vld [vmem:[#allocation10 + $0x88] ss:$16 sps:$4 sm:$0xff]  }
  0xbe   :  { %v3772_v55 = vcombine.low %v217_v39, %v221_v40 }
  0xbf   :  { %1017 = vmatpush1.bf16.msra.mxu0 %v3692_v37  ;;  %v214_v37 = vld [vmem:[#allocation5 + $0x338] sm:$0xff] }
  0xc0   :  { %1018 = vmatprep.subr.bf16.mxu0 %v3701_v50  ;;  %1058 = vmatpush1.bf16.msra.mxu1 %v3694_v41  ;;  %v3759_v50 = vcombine.high %v202_v28, %v206_v29  ;;  %v3765_v41 = vcombine.high %v209_v31, %v213_v32  ;;  %v3766_v52 = vcombine.low %v210_v36, %v214_v37  ;;  %v4202_v28 = vld [vmem:[#allocation10 + $0xa8] ss:$16 sps:$4 sm:$0xff]   ;;  %v4207_v29 = vld [vmem:[#allocation10 + $0xc4] ss:$16 sps:$4 sm:$0xff]   ;;  %v4205_v31 = vld [vmem:[#allocation10 + $0xc0] ss:$16 sps:$4 sm:$0xff]  }
  0xc1   :  { %1059 = vmatprep.subr.bf16.mxu1 %v3703_v48  ;;  %v229_v48 = vld [vmem:[#allocation5 + $0x3b0] sm:$0xff]  ;;  %v4208_v32 = vld [vmem:[#allocation10 + $0xc8] ss:$16 sps:$4 sm:$0xff]  }
  0xc2   :  { %v3780_v63 = vcombine.low %v225_v46, %v229_v48 }
  0xc3   :  { %1019 = vmatpush1.bf16.msra.mxu0 %v3700_v44  ;;  %v222_v44 = vld [vmem:[#allocation5 + $0x378] sm:$0xff] }
  0xc4   :  { %1020 = vmatprep.subr.bf16.mxu0 %v3709_v49  ;;  %1060 = vmatpush1.bf16.msra.mxu1 %v3702_v51  ;;  %v3767_v49 = vcombine.high %v210_v36, %v214_v37  ;;  %v3773_v51 = vcombine.high %v217_v39, %v221_v40  ;;  %v3774_v60 = vcombine.low %v218_v43, %v222_v44  ;;  %v4214_v36 = vld [vmem:[#allocation10 + $0xe8] ss:$16 sps:$4 sm:$0xff]   ;;  %v4219_v37 = vld [vmem:[#allocation10 + $0x104] ss:$16 sps:$4 sm:$0xff]   ;;  %v4217_v39 = vld [vmem:[#allocation10 + $0x100] ss:$16 sps:$4 sm:$0xff]  }
  0xc5   :  { %1061 = vmatprep.subr.bf16.mxu1 %v3711_v57  ;;  %v237_v57 = vld [vmem:[#allocation5 + $0x3f0] sm:$0xff]  ;;  %v4220_v40 = vld [vmem:[#allocation10 + $0x108] ss:$16 sps:$4 sm:$0xff]  }
  0xc6   :  { %v3788_v4 = vcombine.low %v233_v56, %v237_v57 }
  0xc7   :  { %1021 = vmatpush1.bf16.msra.mxu0 %v3708_v54  ;;  %v230_v54 = vld [vmem:[#allocation5 + $0x3b8] sm:$0xff] }
  0xc8   :  { %1022 = vmatprep.subr.bf16.mxu0 %v3717_v58  ;;  %1062 = vmatpush1.bf16.msra.mxu1 %v3710_v59  ;;  %v3775_v58 = vcombine.high %v218_v43, %v222_v44  ;;  %v3781_v59 = vcombine.high %v225_v46, %v229_v48  ;;  %v3783_v0 = vcombine.high %v226_v53, %v230_v54  ;;  %v4226_v43 = vld [vmem:[#allocation10 + $0x128] ss:$16 sps:$4 sm:$0xff]   ;;  %v4231_v44 = vld [vmem:[#allocation10 + $0x144] ss:$16 sps:$4 sm:$0xff]   ;;  %v4229_v46 = vld [vmem:[#allocation10 + $0x140] ss:$16 sps:$4 sm:$0xff]  }
  0xc9   :  { %1063 = vmatprep.subr.bf16.mxu1 %v3719_v1  ;;  %v3789_v1 = vcombine.high %v233_v56, %v237_v57  ;;  %v4232_v48 = vld [vmem:[#allocation10 + $0x148] ss:$16 sps:$4 sm:$0xff]   ;;  %v4241_v56 = vld [vmem:[#allocation10 + $0x180] ss:$16 sps:$4 sm:$0xff]  }
  0xca   :  { %v4244_v57 = vld [vmem:[#allocation10 + $0x188] ss:$16 sps:$4 sm:$0xff]  }
  0xcb   :  { %1023 = vmatpush1.bf16.msra.mxu0 %v3716_v62  ;;  %v238_v62 = vld [vmem:[#allocation5 + $0x3f8] sm:$0xff] }
  0xcc   :  { %1024 = vmatprep.subr.bf16.mxu0 %v3725_v2  ;;  %1064 = vmatpush1.bf16.msra.mxu1 %v3718_v3  ;;  %v3782_v2 = vcombine.low %v226_v53, %v230_v54  ;;  %v4171_v3 = vld [vmem:[#allocation10 + $0x4] ss:$16 sps:$4 sm:$0xff]   ;;  %v3791_v5 = vcombine.high %v234_v61, %v238_v62  ;;  %v3790_v8 = vcombine.low %v234_v61, %v238_v62  ;;  %v4238_v53 = vld [vmem:[#allocation10 + $0x168] ss:$16 sps:$4 sm:$0xff]  }
  0xcd   :  { %1065 = vmatprep.subr.bf16.mxu1 %v3727_v9  ;;  %v4172_v9 = vld [vmem:[#allocation10 + $0x8] ss:$16 sps:$4 sm:$0xff]   ;;  %v4243_v54 = vld [vmem:[#allocation10 + $0x184] ss:$16 sps:$4 sm:$0xff]  }
  0xce   :  { %v4250_v61 = vld [vmem:[#allocation10 + $0x1a8] ss:$16 sps:$4 sm:$0xff]   ;;  %v4255_v62 = vld [vmem:[#allocation10 + $0x1c4] ss:$16 sps:$4 sm:$0xff]  }
  0xcf   :  { %1025 = vmatpush1.bf16.msra.mxu0 %v3724_v6  ;;  %v4169_v6 = vld [vmem:[#allocation10] ss:$16 sps:$4 sm:$0xff]  }
  0xd0   :  { %1026 = vmatprep.subr.bf16.mxu0 %v3733_v11  ;;  %1066 = vmatpush1.bf16.msra.mxu1 %v3726_v12  ;;  %v4177_v11 = vld [vmem:[#allocation10 + $0x24] ss:$16 sps:$4 sm:$0xff]   ;;  %v4180_v12 = vld [vmem:[#allocation10 + $0x2c] ss:$16 sps:$4 sm:$0xff]  }
  0xd1   :  { %1067 = vmatprep.subr.bf16.mxu1 %v3735_v18  ;;  %v4184_v18 = vld [vmem:[#allocation10 + $0x48] ss:$16 sps:$4 sm:$0xff]  }
  0xd3   :  { %1027 = vmatpush1.bf16.msra.mxu0 %v3732_v15  ;;  %v4183_v15 = vld [vmem:[#allocation10 + $0x44] ss:$16 sps:$4 sm:$0xff]  }
  0xd4   :  { %1028 = vmatprep.subr.bf16.mxu0 %v3741_v19  ;;  %1068 = vmatpush1.bf16.msra.mxu1 %v3734_v20  ;;  %v4189_v19 = vld [vmem:[#allocation10 + $0x64] ss:$16 sps:$4 sm:$0xff]   ;;  %v4192_v20 = vld [vmem:[#allocation10 + $0x6c] ss:$16 sps:$4 sm:$0xff]  }
  0xd5   :  { %1069 = vmatprep.subr.bf16.mxu1 %v3743_v25  ;;  %v4201_v25 = vld [vmem:[#allocation10 + $0xa4] ss:$16 sps:$4 sm:$0xff]  }
  0xd7   :  { %1029 = vmatpush1.bf16.msra.mxu0 %v3740_v22  ;;  %v4198_v22 = vld [vmem:[#allocation10 + $0x8c] ss:$16 sps:$4 sm:$0xff]  }
  0xd8   :  { %1030 = vmatprep.subr.bf16.mxu0 %v3749_v26  ;;  %1070 = vmatpush1.bf16.msra.mxu1 %v3742_v27  ;;  %v4204_v26 = vld [vmem:[#allocation10 + $0xac] ss:$16 sps:$4 sm:$0xff]   ;;  %v4199_v27 = vld [vmem:[#allocation10 + $0xa0] ss:$16 sps:$4 sm:$0xff]  }
  0xd9   :  { %1071 = vmatprep.subr.bf16.mxu1 %v3751_v33  ;;  %v4213_v33 = vld [vmem:[#allocation10 + $0xe4] ss:$16 sps:$4 sm:$0xff]  }
  0xdb   :  { %1031 = vmatpush1.bf16.msra.mxu0 %v3748_v30  ;;  %v4210_v30 = vld [vmem:[#allocation10 + $0xcc] ss:$16 sps:$4 sm:$0xff]  }
  0xdc   :  { %1032 = vmatprep.subr.bf16.mxu0 %v3757_v34  ;;  %1072 = vmatpush1.bf16.msra.mxu1 %v3750_v35  ;;  %v4216_v34 = vld [vmem:[#allocation10 + $0xec] ss:$16 sps:$4 sm:$0xff]   ;;  %v4211_v35 = vld [vmem:[#allocation10 + $0xe0] ss:$16 sps:$4 sm:$0xff]  }
  0xdd   :  { %1073 = vmatprep.subr.bf16.mxu1 %v3759_v50  ;;  %v4225_v50 = vld [vmem:[#allocation10 + $0x124] ss:$16 sps:$4 sm:$0xff]  }
  0xdf   :  { %1033 = vmatpush1.bf16.msra.mxu0 %v3756_v38  ;;  %v4222_v38 = vld [vmem:[#allocation10 + $0x10c] ss:$16 sps:$4 sm:$0xff]  }
  0xe0   :  { %1034 = vmatprep.subr.bf16.mxu0 %v3765_v41  ;;  %1074 = vmatpush1.bf16.msra.mxu1 %v3758_v42  ;;  %v4228_v41 = vld [vmem:[#allocation10 + $0x12c] ss:$16 sps:$4 sm:$0xff]   ;;  %v4223_v42 = vld [vmem:[#allocation10 + $0x120] ss:$16 sps:$4 sm:$0xff]  }
  0xe1   :  { %1075 = vmatprep.subr.bf16.mxu1 %v3767_v49  ;;  %v4237_v49 = vld [vmem:[#allocation10 + $0x164] ss:$16 sps:$4 sm:$0xff]  }
  0xe3   :  { %1035 = vmatpush1.bf16.msra.mxu0 %v3764_v45  ;;  %v4234_v45 = vld [vmem:[#allocation10 + $0x14c] ss:$16 sps:$4 sm:$0xff]  }
  0xe4   :  { %1036 = vmatprep.subr.bf16.mxu0 %v3773_v51  ;;  %1076 = vmatpush1.bf16.msra.mxu1 %v3766_v52  ;;  %v4240_v51 = vld [vmem:[#allocation10 + $0x16c] ss:$16 sps:$4 sm:$0xff]   ;;  %v4235_v52 = vld [vmem:[#allocation10 + $0x160] ss:$16 sps:$4 sm:$0xff]  }
  0xe5   :  { %1077 = vmatprep.subr.bf16.mxu1 %v3775_v58  ;;  %v4249_v58 = vld [vmem:[#allocation10 + $0x1a4] ss:$16 sps:$4 sm:$0xff]  }
  0xe7   :  { %1037 = vmatpush1.bf16.msra.mxu0 %v3772_v55  ;;  %v4246_v55 = vld [vmem:[#allocation10 + $0x18c] ss:$16 sps:$4 sm:$0xff]  }
  0xe8   :  { %1038 = vmatprep.subr.bf16.mxu0 %v3781_v59  ;;  %1078 = vmatpush1.bf16.msra.mxu1 %v3774_v60  ;;  %v4252_v59 = vld [vmem:[#allocation10 + $0x1ac] ss:$16 sps:$4 sm:$0xff]   ;;  %v4247_v60 = vld [vmem:[#allocation10 + $0x1a0] ss:$16 sps:$4 sm:$0xff]  }
  0xe9   :  { %1079 = vmatprep.subr.bf16.mxu1 %v3783_v0  ;;  %v4253_v0 = vld [vmem:[#allocation10 + $0x1c0] ss:$16 sps:$4 sm:$0xff]  }
  0xeb   :  { %1039 = vmatpush1.bf16.msra.mxu0 %v3780_v63  ;;  %v4258_v63 = vld [vmem:[#allocation10 + $0x1cc] ss:$16 sps:$4 sm:$0xff]  }
  0xec   :  { %1040 = vmatprep.subr.bf16.mxu0 %v3789_v1  ;;  %1080 = vmatpush1.bf16.msra.mxu1 %v3782_v2  ;;  %v4256_v1 = vld [vmem:[#allocation10 + $0x1c8] ss:$16 sps:$4 sm:$0xff]   ;;  %v4261_v2 = vld [vmem:[#allocation10 + $0x1e4] ss:$16 sps:$4 sm:$0xff]  }
  0xed   :  { %1081 = vmatprep.subr.bf16.mxu1 %v3791_v5  ;;  %v4262_v5 = vld [vmem:[#allocation10 + $0x1e8] ss:$16 sps:$4 sm:$0xff]  }
  0xef   :  { %1041 = vmatpush1.bf16.msra.mxu0 %v3788_v4  ;;  %v4259_v4 = vld [vmem:[#allocation10 + $0x1e0] ss:$16 sps:$4 sm:$0xff]  }
  0xf0   :  { %2958 = vmatprep.subr.bf16.mxu0 %v4171_v3  ;;  %1082 = vmatpush1.bf16.msra.mxu1 %v3790_v8  ;;  %v4264_v3 = vld [vmem:[#allocation10 + $0x1ec] ss:$16 sps:$4 sm:$0xff]   ;;  %v241_v8 = vlaneseq }
  0xf1   :  { %3122 = vmatprep.subr.bf16.mxu1 %v4174_v7  ;;  %v4270_v7 = vld [vmem:[#allocation10 + $0x20c] ss:$16 sps:$4 sm:$0xff]  }
  0xf2   :  { %1043 = vmatmul.mubr.bf16.vlgmr.msra.gmra.mrb[4].mxu0 %v4916_v10 }
  0xf3   :  { %2959 = vmatpush1.bf16.msra.mxu0 %v4169_v6  ;;  %1084 = vmatmul.mubr.bf16.vlgmr.msra.gmra.mrb[4].mxu1 %v4916_v10  ;;  %v4187_v10 = vld [vmem:[#allocation10 + $0x60] ss:$16 sps:$4 sm:$0xff]   ;;  %v4267_v6 = vld [vmem:[#allocation10 + $0x204] ss:$16 sps:$4 sm:$0xff]  }
  0xf4   :  { %3123 = vmatpush1.bf16.msra.mxu1 %v4172_v9  ;;  %2960 = vmatprep.subr.bf16.mxu0 %v4177_v11  ;;  %v4924_v9 = vshrl.u32 %v241_v8, 7 }
  0xf5   :  { %3124 = vmatprep.subr.bf16.mxu1 %v4180_v12  ;;  %v4929_v12 = vld [vmem:[#allocation7] sm:$0xff] }
  0xf6   :  { %v4927_v11 = vsub.s32 0, %v4924_v9 }
  0xf7   :  { %2961 = vmatpush1.bf16.msra.mxu0 %v4175_v13  ;;  %v4932_v13 = vsub.s32 1, %v4924_v9 }
  0xf8   :  { %3125 = vmatpush1.bf16.msra.mxu1 %v4178_v14  ;;  %2962 = vmatprep.subr.bf16.mxu0 %v4183_v15  ;;  %v244_v14 = vrot.slane %v4929_v12, %v4927_v11  ;;  %v4937_v15 = vsub.s32 3, %v4924_v9 }
  0xf9   :  { %3126 = vmatprep.subr.bf16.mxu1 %v4186_v16  ;;  %v248_v16 = vrot.slane %v4929_v12, %v4932_v13 }
  0xfb   :  { %2963 = vmatpush1.bf16.msra.mxu0 %v4181_v17 }
  0xfc   :  { %3127 = vmatpush1.bf16.msra.mxu1 %v4184_v18  ;;  %2964 = vmatprep.subr.bf16.mxu0 %v4189_v19 }
  0xfd   :  { %3128 = vmatprep.subr.bf16.mxu1 %v4192_v20  ;;  %v256_v20 = vrot.slane %v4929_v12, %v4937_v15 }
  0xff   :  { %2965 = vmatpush1.bf16.msra.mxu0 %v4187_v10 }
 0x100   :  { %3129 = vmatpush1.bf16.msra.mxu1 %v4190_v21  ;;  %2966 = vmatprep.subr.bf16.mxu0 %v4195_v47 }
 0x101   :  { %3130 = vmatprep.subr.bf16.mxu1 %v4198_v22 }
 0x103   :  { %2967 = vmatpush1.bf16.msra.mxu0 %v4193_v23 }
 0x104   :  { %3131 = vmatpush1.bf16.msra.mxu1 %v4196_v24  ;;  %2968 = vmatprep.subr.bf16.mxu0 %v4201_v25 }
 0x105   :  { %3132 = vmatprep.subr.bf16.mxu1 %v4204_v26 }
 0x107   :  { %2969 = vmatpush1.bf16.msra.mxu0 %v4199_v27 }
 0x108   :  { %3133 = vmatpush1.bf16.msra.mxu1 %v4202_v28  ;;  %2970 = vmatprep.subr.bf16.mxu0 %v4207_v29 }
 0x109   :  { %3134 = vmatprep.subr.bf16.mxu1 %v4210_v30 }
 0x10b   :  { %2971 = vmatpush1.bf16.msra.mxu0 %v4205_v31 }
 0x10c   :  { %3135 = vmatpush1.bf16.msra.mxu1 %v4208_v32  ;;  %2972 = vmatprep.subr.bf16.mxu0 %v4213_v33 }
 0x10d   :  { %3136 = vmatprep.subr.bf16.mxu1 %v4216_v34 }
 0x10f   :  { %2973 = vmatpush1.bf16.msra.mxu0 %v4211_v35  ;;  %v4944_v35 = vsub.s32 2, %v4924_v9 }
 0x110   :  { %3137 = vmatpush1.bf16.msra.mxu1 %v4214_v36  ;;  %2974 = vmatprep.subr.bf16.mxu0 %v4219_v37 }
 0x111   :  { %3138 = vmatprep.subr.bf16.mxu1 %v4222_v38 }
 0x113   :  { %2975 = vmatpush1.bf16.msra.mxu0 %v4217_v39 }
 0x114   :  { %3139 = vmatpush1.bf16.msra.mxu1 %v4220_v40  ;;  %2976 = vmatprep.subr.bf16.mxu0 %v4225_v50 }
 0x115   :  { %3140 = vmatprep.subr.bf16.mxu1 %v4228_v41  ;;  %v252_v41 = vrot.slane %v4929_v12, %v4944_v35 }
 0x117   :  { %2977 = vmatpush1.bf16.msra.mxu0 %v4223_v42 }
 0x118   :  { %3141 = vmatpush1.bf16.msra.mxu1 %v4226_v43  ;;  %2978 = vmatprep.subr.bf16.mxu0 %v4231_v44 }
 0x119   :  { %3142 = vmatprep.subr.bf16.mxu1 %v4234_v45 }
 0x11b   :  { %2979 = vmatpush1.bf16.msra.mxu0 %v4229_v46 }
 0x11c   :  { %3143 = vmatpush1.bf16.msra.mxu1 %v4232_v48  ;;  %2980 = vmatprep.subr.bf16.mxu0 %v4237_v49 }
 0x11d   :  { %3144 = vmatprep.subr.bf16.mxu1 %v4240_v51 }
 0x11f   :  { %2981 = vmatpush1.bf16.msra.mxu0 %v4235_v52 }
 0x120   :  { %3145 = vmatpush1.bf16.msra.mxu1 %v4238_v53  ;;  %2982 = vmatprep.subr.bf16.mxu0 %v4243_v54 }
 0x121   :  { %3146 = vmatprep.subr.bf16.mxu1 %v4246_v55 }
 0x123   :  { %2983 = vmatpush1.bf16.msra.mxu0 %v4241_v56 }
 0x124   :  { %3147 = vmatpush1.bf16.msra.mxu1 %v4244_v57  ;;  %2984 = vmatprep.subr.bf16.mxu0 %v4249_v58 }
 0x125   :  { %3148 = vmatprep.subr.bf16.mxu1 %v4252_v59 }
 0x127   :  { %2985 = vmatpush1.bf16.msra.mxu0 %v4247_v60 }
 0x128   :  { %3149 = vmatpush1.bf16.msra.mxu1 %v4250_v61  ;;  %2986 = vmatprep.subr.bf16.mxu0 %v4255_v62 }
 0x129   :  { %3150 = vmatprep.subr.bf16.mxu1 %v4258_v63 }
 0x12b   :  { %2987 = vmatpush1.bf16.msra.mxu0 %v4253_v0 }
 0x12c   :  { %3151 = vmatpush1.bf16.msra.mxu1 %v4256_v1  ;;  %2988 = vmatprep.subr.bf16.mxu0 %v4261_v2 }
 0x12d   :  { %3152 = vmatprep.subr.bf16.mxu1 %v4264_v3 }
 0x12f   :  { %2989 = vmatpush1.bf16.msra.mxu0 %v4259_v4 }
 0x130   :  { %3153 = vmatpush1.bf16.msra.mxu1 %v4262_v5  ;;  %2999 = vmatprep.subr.bf16.mxu0 %v4267_v6 }
 0x131   :  { %3163 = vmatprep.subr.bf16.mxu1 %v4270_v7 }
 0x185   :  { %v962_v17 = vpop.f32.mrb[0].mxu0  ;;  %v1003_v23 = vpop.f32.mrb[0].mxu1 }
 0x186   :  { %v963_v18 = vadd.f32 %v962_v17, %v244_v14  ;;  %v964_v19 = vpop.f32.mrb[1].mxu0  ;;  %v1005_v25 = vpop.f32.mrb[1].mxu1  ;;  %v1004_v49 = vadd.f32 %v1003_v23, %v252_v41 }
 0x187   :  { %v965_v10 = vadd.f32 %v964_v19, %v248_v16  ;;  %v966_v21 = vpop.f32.mrb[2].mxu0  ;;  %v1006_v27 = vadd.f32 %v1005_v25, %v256_v20  ;;  %v1007_v28 = vpop.f32.mrb[2].mxu1 }
 0x188   :  { %v1092_v47 = vmax.f32 %v963_v18, 0.0  ;;  %v967_v22 = vpop.f32.mrb[3].mxu0  ;;  %v1008_v30 = vpop.f32.mrb[3].mxu1  ;;  %v1094_v57 = vmax.f32 %v1004_v49, 0.0 }
 0x189   :  { %v1093_v24 = vmax.f32 %v965_v10, 0.0  ;;  %v1095_v32 = vmax.f32 %v1006_v27, 0.0 }
 0x18a   :  { %v1100_v26 = vrot.slane %v1092_v47, 4  ;;  %v1112_v0 = vrot.slane %v1094_v57, 4 }
 0x18b   :  { %v1106_v29 = vrot.slane %v1093_v24, 4  ;;  %v1118_v36 = vrot.slane %v1095_v32, 4 }
 0x18c   :  { %v1101_v31 = vadd.f32 %v1100_v26, %v1092_v47  ;;  %v1113_v7 = vadd.f32 %v1112_v0, %v1094_v57 }
 0x18d   :  { %v1107_v33 = vadd.f32 %v1106_v29, %v1093_v24  ;;  %v1119_v39 = vadd.f32 %v1118_v36, %v1095_v32 }
 0x18e   :  { %v1102_v34 = vrot.slane %v1101_v31, 2  ;;  %v1114_v20 = vrot.slane %v1113_v7, 2 }
 0x18f   :  { %v1108_v37 = vrot.slane %v1107_v33, 2  ;;  %v1120_v42 = vrot.slane %v1119_v39, 2 }
 0x190   :  { %v1103_v38 = vadd.f32 %v1102_v34, %v1101_v31  ;;  %v1115_v25 = vadd.f32 %v1114_v20, %v1113_v7  ;;  %v4951_v34 = vld [vmem:[%s5084_s3] sm:$0xff]  ;;  %v4279_v20 = vld [vmem:[#allocation10 + $0x244] ss:$16 sps:$4 sm:$0xff]  }
 0x191   :  { %v1109_v40 = vadd.f32 %v1108_v37, %v1107_v33  ;;  %v1121_v45 = vadd.f32 %v1120_v42, %v1119_v39  ;;  %v1257_v37 = vrot.slane %v4951_v34, %v4927_v11  ;;  %v1261_v39 = vrot.slane %v4951_v34, %v4932_v13  ;;  %v4276_v7 = vld [vmem:[#allocation10 + $0x22c] ss:$16 sps:$4 sm:$0xff]  }
 0x192   :  { %v1104_v50 = vrot.slane %v1103_v38, 1  ;;  %v1116_v31 = vrot.slane %v1115_v25, 1 }
 0x193   :  { %v1110_v43 = vrot.slane %v1109_v40, 1  ;;  %v1122_v51 = vrot.slane %v1121_v45, 1 }
 0x194   :  { %v1105_v44 = vadd.f32 %v1104_v50, %v1103_v38  ;;  %v1117_v36 = vadd.f32 %v1116_v31, %v1115_v25  ;;  %v4957_v50 = vld [vmem:[#allocation8] sm:$0xff] }
 0x195   :  { %v1111_v46 = vadd.f32 %v1110_v43, %v1109_v40  ;;  %v1123_v54 = vadd.f32 %v1122_v51, %v1121_v45  ;;  %v1269_v43 = vrot.slane %v4951_v34, %v4937_v15  ;;  %v4288_v31 = vld [vmem:[#allocation10 + $0x26c] ss:$16 sps:$4 sm:$0xff]  }
 0x196   :  { %v1148_v48 = vmul.f32 0.125, %v1105_v44  ;;  %v1150_v38 = vmul.f32 0.125, %v1117_v36 }
 0x197   :  { %v1149_v52 = vmul.f32 0.125, %v1111_v46  ;;  %v1151_v58 = vmul.f32 0.125, %v1123_v54 }
 0x198   :  { %v1156_v53 = vsub.f32 %v1092_v47, %v1148_v48  ;;  %v4961_v44 = vsub.f32 %v1094_v57, %v1150_v38  ;;  %v1347_v48 = vrot.slane %v4957_v50, %v4927_v11  ;;  %v4283_v38 = vld [vmem:[#allocation10 + $0x260] ss:$16 sps:$4 sm:$0xff]  }
 0x199   :  { %v1157_v55 = vsub.f32 %v1093_v24, %v1149_v52  ;;  %v1159_v61 = vsub.f32 %v1095_v32, %v1151_v58  ;;  %v1351_v52 = vrot.slane %v4957_v50, %v4932_v13 }
 0x19a   :  { %v1164_v56 = vmul.f32 %v1156_v53, %v1156_v53  ;;  %v1166_v58 = vmul.f32 %v4961_v44, %v4961_v44 }
 0x19b   :  { %v1165_v59 = vmul.f32 %v1157_v55, %v1157_v55  ;;  %v1167_v1 = vmul.f32 %v1159_v61, %v1159_v61 }
 0x19c   :  { %v1172_v60 = vrot.slane %v1164_v56, 4 }
 0x19d   :  { %v1178_v62 = vrot.slane %v1165_v59, 4  ;;  %v1190_v4 = vrot.slane %v1167_v1, 4 }
 0x19e   :  { %v1173_v63 = vadd.f32 %v1172_v60, %v1164_v56 }
 0x19f   :  { %v1179_v2 = vadd.f32 %v1178_v62, %v1165_v59  ;;  %v1191_v8 = vadd.f32 %v1190_v4, %v1167_v1  ;;  %v1359_v62 = vrot.slane %v4957_v50, %v4937_v15  ;;  %v4265_v4 = vld [vmem:[#allocation10 + $0x200] ss:$16 sps:$4 sm:$0xff]  }
 0x1a0   :  { %v1174_v3 = vrot.slane %v1173_v63, 2 }
 0x1a1   :  { %v1180_v5 = vrot.slane %v1179_v2, 2  ;;  %v1192_v17 = vrot.slane %v1191_v8, 2 }
 0x1a2   :  { %v1175_v6 = vadd.f32 %v1174_v3, %v1173_v63  ;;  %v4975_v63 = vsub.s32 5, %v4924_v9 }
 0x1a3   :  { %v1181_v14 = vadd.f32 %v1180_v5, %v1179_v2  ;;  %v1193_v10 = vadd.f32 %v1192_v17, %v1191_v8  ;;  %v1184_v2 = vrot.slane %v1166_v58, 4 }
 0x1a4   :  { %v1176_v16 = vrot.slane %v1175_v6, 1 }
 0x1a5   :  { %v1182_v18 = vrot.slane %v1181_v14, 1  ;;  %v1194_v22 = vrot.slane %v1193_v10, 1  ;;  %v1185_v17 = vadd.f32 %v1184_v2, %v1166_v58  ;;  %v4300_v58 = vld [vmem:[#allocation10 + $0x2ac] ss:$16 sps:$4 sm:$0xff]  }
 0x1a6   :  { %v1177_v19 = vadd.f32 %v1176_v16, %v1175_v6  ;;  %v4273_v6 = vld [vmem:[#allocation10 + $0x224] ss:$16 sps:$4 sm:$0xff]  }
 0x1a7   :  { %v1183_v21 = vadd.f32 %v1182_v18, %v1181_v14  ;;  %v1195_v26 = vadd.f32 %v1194_v22, %v1193_v10  ;;  %v4274_v18 = vld [vmem:[#allocation10 + $0x228] ss:$16 sps:$4 sm:$0xff]   ;;  %v4282_v10 = vld [vmem:[#allocation10 + $0x24c] ss:$16 sps:$4 sm:$0xff]  }
 0x1a8   :  { %v1220_v47 = vmul.f32 0.125, %v1177_v19 }
 0x1a9   :  { %v1221_v23 = vmul.f32 0.125, %v1183_v21  ;;  %v1223_v29 = vmul.f32 0.125, %v1195_v26  ;;  %v1186_v26 = vrot.slane %v1185_v17, 2 }
 0x1aa   :  { %v1228_v24 = vmax.f32 %v1220_v47, 0.0 }
 0x1ab   :  { %v1229_v27 = vmax.f32 %v1221_v23, 0.0  ;;  %v1231_v32 = vmax.f32 %v1223_v29, 0.0 }
 0x1ac   :  { %v1236_v28 = vadd.f32 1e-05, %v1228_v24 }
 0x1ad   :  { %v1237_v30 = vadd.f32 1e-05, %v1229_v27  ;;  %v1239_v33 = vadd.f32 1e-05, %v1231_v32  ;;  %v4277_v27 = vld [vmem:[#allocation10 + $0x240] ss:$16 sps:$4 sm:$0xff]  }
 0x1ae   :  { %4585 = vrsqrt.f32 %v1236_v28  ;;  %v4280_v28 = vld [vmem:[#allocation10 + $0x248] ss:$16 sps:$4 sm:$0xff]  }
 0x1af   :  { %4587 = vrsqrt.f32 %v1237_v30  ;;  %v4285_v30 = vld [vmem:[#allocation10 + $0x264] ss:$16 sps:$4 sm:$0xff]  }
 0x1b0   :  { %4589 = vrsqrt.f32 %v1239_v33 }
 0x1b8   :  { %v4586_v40 = vpop.eup %4585 }
 0x1b9   :  { %v4588_v41 = vpop.eup %4587  ;;  %v1294_v42 = vmul.f32 %v4586_v40, %v1257_v37  ;;  %v1187_v37 = vadd.f32 %v1186_v26, %v1185_v17  ;;  %v4982_v40 = vsub.s32 4, %v4924_v9  ;;  %v4312_v17 = vld [vmem:[#allocation10 + $0x2ec] ss:$16 sps:$4 sm:$0xff]  }
 0x1ba   :  { %v1295_v45 = vmul.f32 %v4588_v41, %v1261_v39  ;;  %v4590_v49 = vpop.eup %4589  ;;  %v4286_v39 = vld [vmem:[#allocation10 + $0x268] ss:$16 sps:$4 sm:$0xff]  }
 0x1bb   :  { %v1305_v46 = vrot.slane %v1294_v42, %v4927_v11  ;;  %v1297_v56 = vmul.f32 %v4590_v49, %v1269_v43  ;;  %v4291_v42 = vld [vmem:[#allocation10 + $0x284] ss:$16 sps:$4 sm:$0xff]   ;;  %v4294_v43 = vld [vmem:[#allocation10 + $0x28c] ss:$16 sps:$4 sm:$0xff]   ;;  %v260_v49 = vrot.slane %v4929_v12, %v4982_v40 }
 0x1bc   :  { %v1309_v51 = vrot.slane %v1295_v45, %v4927_v11  ;;  %v4985_v45 = vsub.s32 7, %v4924_v9 }
 0x1bd   :  { %v1334_v54 = vmul.f32 %v1305_v46, %v1156_v53  ;;  %v1317_v60 = vrot.slane %v1297_v56, %v4927_v11  ;;  %v4268_v53 = vld [vmem:[#allocation10 + $0x208] ss:$16 sps:$4 sm:$0xff]   ;;  %v4297_v56 = vld [vmem:[#allocation10 + $0x2a4] ss:$16 sps:$4 sm:$0xff]  }
 0x1be   :  { %v1335_v59 = vmul.f32 %v1309_v51, %v1157_v55  ;;  %v264_v55 = vrot.slane %v4929_v12, %v4975_v63  ;;  %v4289_v51 = vld [vmem:[#allocation10 + $0x280] ss:$16 sps:$4 sm:$0xff]  }
 0x1bf   :  { %v1384_v57 = vadd.f32 %v1347_v48, %v1334_v54  ;;  %v1337_v1 = vmul.f32 %v1317_v60, %v1159_v61  ;;  %v4271_v61 = vld [vmem:[#allocation10 + $0x220] ss:$16 sps:$4 sm:$0xff]   ;;  %v1188_v48 = vrot.slane %v1187_v37, 1 }
 0x1c0   :  { %v1385_v0 = vadd.f32 %v1351_v52, %v1335_v59  ;;  %v4292_v52 = vld [vmem:[#allocation10 + $0x288] ss:$16 sps:$4 sm:$0xff]   ;;  %v272_v59 = vrot.slane %v4929_v12, %v4985_v45 }
 0x1c1   :  { %v1392_v5 = vpack.c.bf16 %v1384_v57, %v1384_v57  ;;  %v1387_v8 = vadd.f32 %v1359_v62, %v1337_v1  ;;  %v1189_v60 = vadd.f32 %v1188_v48, %v1187_v37  ;;  %v4298_v1 = vld [vmem:[#allocation10 + $0x2a8] ss:$16 sps:$4 sm:$0xff]  }
 0x1c2   :  { %v1393_v3 = vpack.c.bf16 %v1385_v0, %v1385_v0  ;;  %v4295_v0 = vld [vmem:[#allocation10 + $0x2a0] ss:$16 sps:$4 sm:$0xff]  }
 0x1c3   :  { %v1395_v14 = vpack.c.bf16 %v1387_v8, %v1387_v8  ;;  %v4301_v8 = vld [vmem:[#allocation10 + $0x2c0] ss:$16 sps:$4 sm:$0xff]  }
 0x1c4   :  { %2990 = vmatprep.mubr.bf16.mxu0 %v1393_v3  ;;  %3154 = vmatprep.mubr.bf16.mxu1 %v1393_v3  ;;  %v4303_v3 = vld [vmem:[#allocation10 + $0x2c4] ss:$16 sps:$4 sm:$0xff]  }
 0x1c5   :  { %2991 = vmatmul.mubr.bf16.vlgmr.msra.gmra.mrb[8].mxu0 %v1392_v5  ;;  %3155 = vmatmul.mubr.bf16.vlgmr.msra.gmra.mrb[8].mxu1 %v1392_v5  ;;  %v1044_v16 = vpop.f32.mrb[4].mxu0 }
 0x1c6   :  { %3000 = vmatpush1.bf16.msra.mxu0 %v4265_v4  ;;  %3164 = vmatpush1.bf16.msra.mxu1 %v4268_v53  ;;  %v1046_v19 = vpop.f32.mrb[5].mxu0  ;;  %v4979_v23 = vpop.f32.mrb[4].mxu1  ;;  %v1045_v62 = vadd.f32 %v1044_v16, %v260_v49  ;;  %v4306_v4 = vld [vmem:[#allocation10 + $0x2cc] ss:$16 sps:$4 sm:$0xff]   ;;  %v4309_v16 = vld [vmem:[#allocation10 + $0x2e4] ss:$16 sps:$4 sm:$0xff]  }
 0x1c7   :  { %3001 = vmatprep.subr.bf16.mxu0 %v4273_v6  ;;  %3165 = vmatprep.subr.bf16.mxu1 %v4276_v7  ;;  %v1047_v21 = vadd.f32 %v1046_v19, %v264_v55  ;;  %v1048_v47 = vpop.f32.mrb[6].mxu0  ;;  %v1087_v25 = vpop.f32.mrb[5].mxu1  ;;  %v1222_v6 = vmul.f32 0.125, %v1189_v60  ;;  %v4304_v55 = vld [vmem:[#allocation10 + $0x2c8] ss:$16 sps:$4 sm:$0xff]  }
 0x1c8   :  { %3031 = vmatprep.mubr.bf16.mxu0 %v1395_v14  ;;  %3195 = vmatprep.mubr.bf16.mxu1 %v1395_v14  ;;  %v1049_v22 = vpop.f32.mrb[7].mxu0  ;;  %v1089_v29 = vpop.f32.mrb[6].mxu1  ;;  %v1088_v53 = vadd.f32 %v1087_v25, %v272_v59  ;;  %v4993_v7 = vmax.f32 %v1045_v62, 0.0  ;;  %v4336_v59 = vld [vmem:[#allocation10 + $0x36c] ss:$16 sps:$4 sm:$0xff]  }
 0x1c9   :  { %v1097_v24 = vmax.f32 %v1047_v21, 0.0  ;;  %v1090_v33 = vpop.f32.mrb[7].mxu1  ;;  %v1230_v19 = vmax.f32 %v1222_v6, 0.0  ;;  %v4310_v21 = vld [vmem:[#allocation10 + $0x2e8] ss:$16 sps:$4 sm:$0xff]  }
 0x1ca   :  { %3002 = vmatpush1.bf16.msra.mxu0 %v4271_v61  ;;  %3166 = vmatpush1.bf16.msra.mxu1 %v4274_v18  ;;  %v4997_v61 = vmax.f32 %v1088_v53, 0.0  ;;  %v4315_v22 = vld [vmem:[#allocation10 + $0x304] ss:$16 sps:$4 sm:$0xff]   ;;  %v4313_v29 = vld [vmem:[#allocation10 + $0x300] ss:$16 sps:$4 sm:$0xff]  }
 0x1cb   :  { %3003 = vmatprep.subr.bf16.mxu0 %v4279_v20  ;;  %3167 = vmatprep.subr.bf16.mxu1 %v4282_v10  ;;  %v1130_v32 = vrot.slane %v1097_v24, 4  ;;  %v1124_v20 = vrot.slane %v4993_v7, 4  ;;  %v4307_v10 = vld [vmem:[#allocation10 + $0x2e0] ss:$16 sps:$4 sm:$0xff]   ;;  %v4324_v33 = vld [vmem:[#allocation10 + $0x32c] ss:$16 sps:$4 sm:$0xff]  }
 0x1cc   :  { %v1142_v25 = vrot.slane %v4997_v61, 4 }
 0x1cd   :  { %v1131_v36 = vadd.f32 %v1130_v32, %v1097_v24  ;;  %v4321_v32 = vld [vmem:[#allocation10 + $0x324] ss:$16 sps:$4 sm:$0xff]  }
 0x1ce   :  { %3004 = vmatpush1.bf16.msra.mxu0 %v4277_v27  ;;  %3168 = vmatpush1.bf16.msra.mxu1 %v4280_v28  ;;  %v1238_v27 = vadd.f32 1e-05, %v1230_v19  ;;  %v1125_v28 = vadd.f32 %v1124_v20, %v4993_v7 }
 0x1cf   :  { %3005 = vmatprep.subr.bf16.mxu0 %v4285_v30  ;;  %3169 = vmatprep.subr.bf16.mxu1 %v4288_v31  ;;  %v1132_v41 = vrot.slane %v1131_v36, 2  ;;  %v4316_v30 = vld [vmem:[#allocation10 + $0x308] ss:$16 sps:$4 sm:$0xff]  }
 0x1d0   :  { %4591 = vrsqrt.f32 %v1238_v27 }
 0x1d1   :  { %v1133_v46 = vadd.f32 %v1132_v41, %v1131_v36  ;;  %v1143_v36 = vadd.f32 %v1142_v25, %v4997_v61  ;;  %v4322_v41 = vld [vmem:[#allocation10 + $0x328] ss:$16 sps:$4 sm:$0xff]   ;;  %v4354_v25 = vld [vmem:[#allocation10 + $0x3cc] ss:$16 sps:$4 sm:$0xff]  }
 0x1d2   :  { %3006 = vmatpush1.bf16.msra.mxu0 %v4283_v38  ;;  %3170 = vmatpush1.bf16.msra.mxu1 %v4286_v39  ;;  %v1126_v38 = vrot.slane %v1125_v28, 2  ;;  %v4319_v39 = vld [vmem:[#allocation10 + $0x320] ss:$16 sps:$4 sm:$0xff]  }
 0x1d3   :  { %v1134_v54 = vrot.slane %v1133_v46, 1  ;;  %3007 = vmatprep.subr.bf16.mxu0 %v4291_v42  ;;  %3171 = vmatprep.subr.bf16.mxu1 %v4294_v43  ;;  %v4327_v43 = vld [vmem:[#allocation10 + $0x344] ss:$16 sps:$4 sm:$0xff]   ;;  %v1144_v48 = vrot.slane %v1143_v36, 2 }
 0x1d5   :  { %v1135_v57 = vadd.f32 %v1134_v54, %v1133_v46  ;;  %v4330_v46 = vld [vmem:[#allocation10 + $0x34c] ss:$16 sps:$4 sm:$0xff]   ;;  %v4328_v54 = vld [vmem:[#allocation10 + $0x348] ss:$16 sps:$4 sm:$0xff]  }
 0x1d6   :  { %3008 = vmatpush1.bf16.msra.mxu0 %v4289_v51  ;;  %3172 = vmatpush1.bf16.msra.mxu1 %v4292_v52  ;;  %v1127_v51 = vadd.f32 %v1126_v38, %v1125_v28  ;;  %v4325_v52 = vld [vmem:[#allocation10 + $0x340] ss:$16 sps:$4 sm:$0xff]  }
 0x1d7   :  { %v1153_v2 = vmul.f32 0.125, %v1135_v57  ;;  %3009 = vmatprep.subr.bf16.mxu0 %v4297_v56  ;;  %3173 = vmatprep.subr.bf16.mxu1 %v4300_v58  ;;  %v4333_v58 = vld [vmem:[#allocation10 + $0x364] ss:$16 sps:$4 sm:$0xff]   ;;  %v1145_v57 = vadd.f32 %v1144_v48, %v1143_v36  ;;  %v4360_v36 = vld [vmem:[#allocation10 + $0x3ec] ss:$16 sps:$4 sm:$0xff]  }
 0x1d8   :  { %v1128_v62 = vrot.slane %v1127_v51, 1  ;;  %v4363_v48 = vld [vmem:[#allocation10 + $0x404] ss:$16 sps:$4 sm:$0xff]  }
 0x1d9   :  { %v4991_v5 = vsub.f32 %v1097_v24, %v1153_v2  ;;  %v4318_v24 = vld [vmem:[#allocation10 + $0x30c] ss:$16 sps:$4 sm:$0xff]   ;;  %v1265_v2 = vrot.slane %v4951_v34, %v4944_v35  ;;  %v1146_v53 = vrot.slane %v1145_v57, 1 }
 0x1da   :  { %3010 = vmatpush1.bf16.msra.mxu0 %v4295_v0  ;;  %3174 = vmatpush1.bf16.msra.mxu1 %v4298_v1  ;;  %v4331_v0 = vld [vmem:[#allocation10 + $0x360] ss:$16 sps:$4 sm:$0xff]   ;;  %v4334_v1 = vld [vmem:[#allocation10 + $0x368] ss:$16 sps:$4 sm:$0xff]   ;;  %v4592_v6 = vpop.eup %4591 }
 0x1db   :  { %v1169_v14 = vmul.f32 %v4991_v5, %v4991_v5  ;;  %3011 = vmatprep.subr.bf16.mxu0 %v4303_v3  ;;  %3175 = vmatprep.subr.bf16.mxu1 %v4306_v4  ;;  %v4339_v3 = vld [vmem:[#allocation10 + $0x384] ss:$16 sps:$4 sm:$0xff]   ;;  %v4342_v4 = vld [vmem:[#allocation10 + $0x38c] ss:$16 sps:$4 sm:$0xff]   ;;  %v1147_v19 = vadd.f32 %v1146_v53, %v1145_v57  ;;  %v4373_v53 = vld [vmem:[#allocation10 + $0x440] ss:$16 sps:$4 sm:$0xff]  }
 0x1dd   :  { %v1202_v18 = vrot.slane %v1169_v14, 4 }
 0x1de   :  { %3012 = vmatpush1.bf16.msra.mxu0 %v4301_v8  ;;  %3176 = vmatpush1.bf16.msra.mxu1 %v4304_v55  ;;  %v1129_v8 = vadd.f32 %v1128_v62, %v1127_v51  ;;  %v4337_v55 = vld [vmem:[#allocation10 + $0x380] ss:$16 sps:$4 sm:$0xff]  }
 0x1df   :  { %v1203_v47 = vadd.f32 %v1202_v18, %v1169_v14  ;;  %3013 = vmatprep.subr.bf16.mxu0 %v4309_v16  ;;  %3177 = vmatprep.subr.bf16.mxu1 %v4312_v17  ;;  %v4340_v14 = vld [vmem:[#allocation10 + $0x388] ss:$16 sps:$4 sm:$0xff]   ;;  %v1296_v16 = vmul.f32 %v4592_v6, %v1265_v2  ;;  %v4345_v17 = vld [vmem:[#allocation10 + $0x3a4] ss:$16 sps:$4 sm:$0xff]   ;;  %v4348_v18 = vld [vmem:[#allocation10 + $0x3ac] ss:$16 sps:$4 sm:$0xff]  }
 0x1e0   :  { %v1152_v20 = vmul.f32 0.125, %v1129_v8  ;;  %v4367_v62 = vld [vmem:[#allocation10 + $0x420] ss:$16 sps:$4 sm:$0xff]   ;;  %v4378_v2 = vld [vmem:[#allocation10 + $0x44c] ss:$16 sps:$4 sm:$0xff]  }
 0x1e1   :  { %v1204_v26 = vrot.slane %v1203_v47, 2  ;;  %v4376_v6 = vld [vmem:[#allocation10 + $0x448] ss:$16 sps:$4 sm:$0xff]   ;;  %v4381_v8 = vld [vmem:[#allocation10 + $0x464] ss:$16 sps:$4 sm:$0xff]  }
 0x1e2   :  { %3014 = vmatpush1.bf16.msra.mxu0 %v4307_v10  ;;  %3178 = vmatpush1.bf16.msra.mxu1 %v4310_v21  ;;  %v1277_v10 = vrot.slane %v4951_v34, %v4975_v63  ;;  %v4343_v21 = vld [vmem:[#allocation10 + $0x3a0] ss:$16 sps:$4 sm:$0xff]   ;;  %v5009_v28 = vsub.f32 %v4993_v7, %v1152_v20 }
 0x1e3   :  { %v1205_v31 = vadd.f32 %v1204_v26, %v1203_v47  ;;  %3015 = vmatprep.subr.bf16.mxu0 %v4315_v22  ;;  %3179 = vmatprep.subr.bf16.mxu1 %v4318_v24  ;;  %v4346_v47 = vld [vmem:[#allocation10 + $0x3a8] ss:$16 sps:$4 sm:$0xff]   ;;  %v1313_v22 = vrot.slane %v1296_v16, %v4927_v11  ;;  %v4351_v24 = vld [vmem:[#allocation10 + $0x3c4] ss:$16 sps:$4 sm:$0xff]   ;;  %v1155_v26 = vmul.f32 0.125, %v1147_v19  ;;  %v5026_v19 = vsub.s32 6, %v4924_v9 }
 0x1e5   :  { %v1206_v37 = vrot.slane %v1205_v31, 1  ;;  %v5015_v38 = vsub.f32 %v4997_v61, %v1155_v26  ;;  %v4366_v61 = vld [vmem:[#allocation10 + $0x40c] ss:$16 sps:$4 sm:$0xff]  }
 0x1e6   :  { %3016 = vmatpush1.bf16.msra.mxu0 %v4313_v29  ;;  %3180 = vmatpush1.bf16.msra.mxu1 %v4316_v30  ;;  %v4349_v29 = vld [vmem:[#allocation10 + $0x3c0] ss:$16 sps:$4 sm:$0xff]   ;;  %v4352_v30 = vld [vmem:[#allocation10 + $0x3c8] ss:$16 sps:$4 sm:$0xff]  }
 0x1e7   :  { %v1207_v42 = vadd.f32 %v1206_v37, %v1205_v31  ;;  %3017 = vmatprep.subr.bf16.mxu0 %v4321_v32  ;;  %3181 = vmatprep.subr.bf16.mxu1 %v4324_v33  ;;  %v1336_v32 = vmul.f32 %v1313_v22, %v4961_v44  ;;  %v4357_v33 = vld [vmem:[#allocation10 + $0x3e4] ss:$16 sps:$4 sm:$0xff]   ;;  %v1355_v37 = vrot.slane %v4957_v50, %v4944_v35  ;;  %v4355_v44 = vld [vmem:[#allocation10 + $0x3e0] ss:$16 sps:$4 sm:$0xff]  }
 0x1e8   :  { %v268_v22 = vrot.slane %v4929_v12, %v5026_v19 }
 0x1e9   :  { %v1225_v49 = vmul.f32 0.125, %v1207_v42  ;;  %v4358_v42 = vld [vmem:[#allocation10 + $0x3e8] ss:$16 sps:$4 sm:$0xff]  }
 0x1ea   :  { %3018 = vmatpush1.bf16.msra.mxu0 %v4319_v39  ;;  %3182 = vmatpush1.bf16.msra.mxu1 %v4322_v41  ;;  %v1367_v39 = vrot.slane %v4957_v50, %v4975_v63  ;;  %v1168_v41 = vmul.f32 %v5009_v28, %v5009_v28  ;;  %v4361_v63 = vld [vmem:[#allocation10 + $0x400] ss:$16 sps:$4 sm:$0xff]  }
 0x1eb   :  { %v1233_v56 = vmax.f32 %v1225_v49, 0.0  ;;  %3019 = vmatprep.subr.bf16.mxu0 %v4327_v43  ;;  %3183 = vmatprep.subr.bf16.mxu1 %v4330_v46  ;;  %v1386_v46 = vadd.f32 %v1355_v37, %v1336_v32  ;;  %v1171_v49 = vmul.f32 %v5015_v38, %v5015_v38  ;;  %v4394_v32 = vld [vmem:[#allocation10 + $0x4a8] ss:$16 sps:$4 sm:$0xff]   ;;  %v4402_v37 = vld [vmem:[#allocation10 + $0x4cc] ss:$16 sps:$4 sm:$0xff]  }
 0x1ed   :  { %v1241_v60 = vadd.f32 1e-05, %v1233_v56  ;;  %v1394_v56 = vpack.c.bf16 %v1386_v46, %v1386_v46 }
 0x1ee   :  { %3020 = vmatpush1.bf16.msra.mxu0 %v4325_v52  ;;  %3184 = vmatpush1.bf16.msra.mxu1 %v4328_v54  ;;  %v1196_v52 = vrot.slane %v1168_v41, 4  ;;  %v4364_v54 = vld [vmem:[#allocation10 + $0x408] ss:$16 sps:$4 sm:$0xff]  }
 0x1ef   :  { %4593 = vrsqrt.f32 %v1241_v60  ;;  %3021 = vmatprep.subr.bf16.mxu0 %v4333_v58  ;;  %3185 = vmatprep.subr.bf16.mxu1 %v4336_v59  ;;  %v4369_v58 = vld [vmem:[#allocation10 + $0x424] ss:$16 sps:$4 sm:$0xff]   ;;  %v4372_v59 = vld [vmem:[#allocation10 + $0x42c] ss:$16 sps:$4 sm:$0xff]  }
 0x1f0   :  { %v1197_v60 = vadd.f32 %v1196_v52, %v1168_v41  ;;  %v4400_v41 = vld [vmem:[#allocation10 + $0x4c8] ss:$16 sps:$4 sm:$0xff]   ;;  %v4414_v52 = vld [vmem:[#allocation10 + $0x50c] ss:$16 sps:$4 sm:$0xff]  }
 0x1f2   :  { %3022 = vmatpush1.bf16.msra.mxu0 %v4331_v0  ;;  %3186 = vmatpush1.bf16.msra.mxu1 %v4334_v1  ;;  %v4370_v0 = vld [vmem:[#allocation10 + $0x428] ss:$16 sps:$4 sm:$0xff]   ;;  %v4375_v1 = vld [vmem:[#allocation10 + $0x444] ss:$16 sps:$4 sm:$0xff]  }
 0x1f3   :  { %3023 = vmatprep.subr.bf16.mxu0 %v4339_v3  ;;  %3187 = vmatprep.subr.bf16.mxu1 %v4342_v4  ;;  %v1198_v4 = vrot.slane %v1197_v60, 2 }
 0x1f5   :  { %v1199_v16 = vadd.f32 %v1198_v4, %v1197_v60  ;;  %v4421_v4 = vld [vmem:[#allocation10 + $0x540] ss:$16 sps:$4 sm:$0xff]  }
 0x1f6   :  { %3024 = vmatpush1.bf16.msra.mxu0 %v4337_v55  ;;  %3188 = vmatpush1.bf16.msra.mxu1 %v4340_v14  ;;  %v4384_v55 = vld [vmem:[#allocation10 + $0x46c] ss:$16 sps:$4 sm:$0xff]  }
 0x1f7   :  { %3025 = vmatprep.subr.bf16.mxu0 %v4345_v17  ;;  %3189 = vmatprep.subr.bf16.mxu1 %v4348_v18  ;;  %v4379_v17 = vld [vmem:[#allocation10 + $0x460] ss:$16 sps:$4 sm:$0xff]   ;;  %v4382_v18 = vld [vmem:[#allocation10 + $0x468] ss:$16 sps:$4 sm:$0xff]  }
 0x1f9   :  { %v4594_v27 = vpop.eup %4593 }
 0x1fa   :  { %3026 = vmatpush1.bf16.msra.mxu0 %v4343_v21  ;;  %3190 = vmatpush1.bf16.msra.mxu1 %v4346_v47  ;;  %v1299_v31 = vmul.f32 %v4594_v27, %v1277_v10  ;;  %v4387_v10 = vld [vmem:[#allocation10 + $0x484] ss:$16 sps:$4 sm:$0xff]   ;;  %v4390_v21 = vld [vmem:[#allocation10 + $0x48c] ss:$16 sps:$4 sm:$0xff]   ;;  %v1200_v47 = vrot.slane %v1199_v16, 1 }
 0x1fb   :  { %3027 = vmatprep.subr.bf16.mxu0 %v4351_v24  ;;  %3191 = vmatprep.subr.bf16.mxu1 %v4354_v25  ;;  %v4385_v24 = vld [vmem:[#allocation10 + $0x480] ss:$16 sps:$4 sm:$0xff]   ;;  %v4388_v25 = vld [vmem:[#allocation10 + $0x488] ss:$16 sps:$4 sm:$0xff]   ;;  %v4393_v27 = vld [vmem:[#allocation10 + $0x4a4] ss:$16 sps:$4 sm:$0xff]  }
 0x1fc   :  { %v1325_v7 = vrot.slane %v1299_v31, %v4927_v11  ;;  %v1201_v9 = vadd.f32 %v1200_v47, %v1199_v16  ;;  %v4391_v31 = vld [vmem:[#allocation10 + $0x4a0] ss:$16 sps:$4 sm:$0xff]   ;;  %v4430_v16 = vld [vmem:[#allocation10 + $0x568] ss:$16 sps:$4 sm:$0xff]  }
 0x1fe   :  { %3028 = vmatpush1.bf16.msra.mxu0 %v4349_v29  ;;  %3192 = vmatpush1.bf16.msra.mxu1 %v4352_v30  ;;  %v1339_v43 = vmul.f32 %v1325_v7, %v4991_v5  ;;  %v1214_v5 = vrot.slane %v1171_v49, 4  ;;  %v4396_v29 = vld [vmem:[#allocation10 + $0x4ac] ss:$16 sps:$4 sm:$0xff]   ;;  %v1086_v30 = vadd.f32 %v4979_v23, %v268_v22  ;;  %v1224_v12 = vmul.f32 0.125, %v1201_v9  ;;  %v4405_v23 = vld [vmem:[#allocation10 + $0x4e4] ss:$16 sps:$4 sm:$0xff]  }
 0x1ff   :  { %3029 = vmatprep.subr.bf16.mxu0 %v4357_v33  ;;  %3193 = vmatprep.subr.bf16.mxu1 %v4360_v36  ;;  %v4399_v36 = vld [vmem:[#allocation10 + $0x4c4] ss:$16 sps:$4 sm:$0xff]  }
 0x200   :  { %v1389_v51 = vadd.f32 %v1367_v39, %v1339_v43  ;;  %v1215_v3 = vadd.f32 %v1214_v5, %v1171_v49  ;;  %v5031_v7 = vmax.f32 %v1086_v30, 0.0  ;;  %v4397_v39 = vld [vmem:[#allocation10 + $0x4c0] ss:$16 sps:$4 sm:$0xff]   ;;  %v1232_v43 = vmax.f32 %v1224_v12, 0.0  ;;  %v4417_v5 = vld [vmem:[#allocation10 + $0x524] ss:$16 sps:$4 sm:$0xff]  }
 0x202   :  { %3030 = vmatpush1.bf16.msra.mxu0 %v4355_v44  ;;  %3194 = vmatpush1.bf16.msra.mxu1 %v4358_v42  ;;  %v1397_v57 = vpack.c.bf16 %v1389_v51, %v1389_v51  ;;  %v1216_v14 = vrot.slane %v1215_v3, 2  ;;  %v4408_v42 = vld [vmem:[#allocation10 + $0x4ec] ss:$16 sps:$4 sm:$0xff]   ;;  %v1136_v46 = vrot.slane %v5031_v7, 4  ;;  %v4411_v51 = vld [vmem:[#allocation10 + $0x504] ss:$16 sps:$4 sm:$0xff]  }
 0x203   :  { %3040 = vmatprep.subr.bf16.mxu0 %v4363_v48  ;;  %3204 = vmatprep.subr.bf16.mxu1 %v4366_v61  ;;  %v4403_v48 = vld [vmem:[#allocation10 + $0x4e0] ss:$16 sps:$4 sm:$0xff]   ;;  %v4406_v61 = vld [vmem:[#allocation10 + $0x4e8] ss:$16 sps:$4 sm:$0xff]  }
 0x204   :  { %v1217_v20 = vadd.f32 %v1216_v14, %v1215_v3  ;;  %v4427_v14 = vld [vmem:[#allocation10 + $0x560] ss:$16 sps:$4 sm:$0xff]  }
 0x205   :  { %3032 = vmatmul.mubr.bf16.vlgmr.msra.gmra.mrb[8].mxu0 %v1394_v56  ;;  %3196 = vmatmul.mubr.bf16.vlgmr.msra.gmra.mrb[8].mxu1 %v1394_v56  ;;  %v4409_v56 = vld [vmem:[#allocation10 + $0x500] ss:$16 sps:$4 sm:$0xff]  }
 0x206   :  { %3041 = vmatpush1.bf16.msra.mxu0 %v4361_v63  ;;  %3205 = vmatpush1.bf16.msra.mxu1 %v4364_v54  ;;  %v1218_v26 = vrot.slane %v1217_v20, 1  ;;  %v1240_v63 = vadd.f32 1e-05, %v1232_v43  ;;  %v1137_v54 = vadd.f32 %v1136_v46, %v5031_v7  ;;  %v1363_v43 = vrot.slane %v4957_v50, %v4982_v40 }
 0x207   :  { %3042 = vmatprep.subr.bf16.mxu0 %v4369_v58  ;;  %3206 = vmatprep.subr.bf16.mxu1 %v4372_v59  ;;  %v4412_v58 = vld [vmem:[#allocation10 + $0x508] ss:$16 sps:$4 sm:$0xff]  }
 0x208   :  { %3072 = vmatprep.mubr.bf16.mxu0 %v1397_v57  ;;  %3236 = vmatprep.mubr.bf16.mxu1 %v1397_v57  ;;  %v1219_v33 = vadd.f32 %v1218_v26, %v1217_v20  ;;  %v4420_v57 = vld [vmem:[#allocation10 + $0x52c] ss:$16 sps:$4 sm:$0xff]   ;;  %4595 = vrsqrt.f32 %v1240_v63  ;;  %v1138_v60 = vrot.slane %v1137_v54, 2 }
 0x209   :  { %v4438_v20 = vld [vmem:[#allocation10 + $0x58c] ss:$16 sps:$4 sm:$0xff]  }
 0x20a   :  { %3043 = vmatpush1.bf16.msra.mxu0 %v4367_v62  ;;  %3207 = vmatpush1.bf16.msra.mxu1 %v4370_v0  ;;  %v1227_v44 = vmul.f32 0.125, %v1219_v33  ;;  %v4415_v62 = vld [vmem:[#allocation10 + $0x520] ss:$16 sps:$4 sm:$0xff]   ;;  %v4418_v0 = vld [vmem:[#allocation10 + $0x528] ss:$16 sps:$4 sm:$0xff]   ;;  %v1139_v3 = vadd.f32 %v1138_v60, %v1137_v54 }
 0x20b   :  { %3044 = vmatprep.subr.bf16.mxu0 %v4375_v1  ;;  %3208 = vmatprep.subr.bf16.mxu1 %v4378_v2  ;;  %v4423_v1 = vld [vmem:[#allocation10 + $0x544] ss:$16 sps:$4 sm:$0xff]   ;;  %v4426_v2 = vld [vmem:[#allocation10 + $0x54c] ss:$16 sps:$4 sm:$0xff]  }
 0x20c   :  { %v1235_v49 = vmax.f32 %v1227_v44, 0.0  ;;  %v4471_v60 = vld [vmem:[#allocation10 + $0x644] ss:$16 sps:$4 sm:$0xff]  }
 0x20e   :  { %3045 = vmatpush1.bf16.msra.mxu0 %v4373_v53  ;;  %3209 = vmatpush1.bf16.msra.mxu1 %v4376_v6  ;;  %v1243_v59 = vadd.f32 1e-05, %v1235_v49  ;;  %v4424_v53 = vld [vmem:[#allocation10 + $0x548] ss:$16 sps:$4 sm:$0xff]   ;;  %v4429_v6 = vld [vmem:[#allocation10 + $0x564] ss:$16 sps:$4 sm:$0xff]  }
 0x20f   :  { %3046 = vmatprep.subr.bf16.mxu0 %v4381_v8  ;;  %3210 = vmatprep.subr.bf16.mxu1 %v4384_v55  ;;  %v4432_v8 = vld [vmem:[#allocation10 + $0x56c] ss:$16 sps:$4 sm:$0xff]   ;;  %v1140_v55 = vrot.slane %v1139_v3, 1  ;;  %v4454_v49 = vld [vmem:[#allocation10 + $0x5e8] ss:$16 sps:$4 sm:$0xff]  }
 0x210   :  { %4597 = vrsqrt.f32 %v1243_v59 }
 0x211   :  { %v1141_v22 = vadd.f32 %v1140_v55, %v1139_v3  ;;  %v4477_v3 = vld [vmem:[#allocation10 + $0x664] ss:$16 sps:$4 sm:$0xff]  }
 0x212   :  { %3047 = vmatpush1.bf16.msra.mxu0 %v4379_v17  ;;  %3211 = vmatpush1.bf16.msra.mxu1 %v4382_v18  ;;  %v1273_v17 = vrot.slane %v4951_v34, %v4982_v40  ;;  %v4435_v18 = vld [vmem:[#allocation10 + $0x584] ss:$16 sps:$4 sm:$0xff]   ;;  %v4457_v40 = vld [vmem:[#allocation10 + $0x600] ss:$16 sps:$4 sm:$0xff]  }
 0x213   :  { %3048 = vmatprep.subr.bf16.mxu0 %v4387_v10  ;;  %3212 = vmatprep.subr.bf16.mxu1 %v4390_v21  ;;  %v4596_v10 = vpop.eup %4595  ;;  %v1285_v21 = vrot.slane %v4951_v34, %v4985_v45  ;;  %v1154_v30 = vmul.f32 0.125, %v1141_v22  ;;  %v4447_v34 = vld [vmem:[#allocation10 + $0x5c4] ss:$16 sps:$4 sm:$0xff]   ;;  %v4490_v22 = vld [vmem:[#allocation10 + $0x6a8] ss:$16 sps:$4 sm:$0xff]  }
 0x214   :  { %v1298_v26 = vmul.f32 %v4596_v10, %v1273_v17  ;;  %v4483_v55 = vld [vmem:[#allocation10 + $0x684] ss:$16 sps:$4 sm:$0xff]   ;;  %v4481_v17 = vld [vmem:[#allocation10 + $0x680] ss:$16 sps:$4 sm:$0xff]   ;;  %v4492_v10 = vld [vmem:[#allocation10 + $0x6ac] ss:$16 sps:$4 sm:$0xff]  }
 0x215   :  { %v5042_v12 = vsub.f32 %v5031_v7, %v1154_v30  ;;  %v4504_v30 = vld [vmem:[#allocation10 + $0x6ec] ss:$16 sps:$4 sm:$0xff]  }
 0x216   :  { %3049 = vmatpush1.bf16.msra.mxu0 %v4385_v24  ;;  %3213 = vmatpush1.bf16.msra.mxu1 %v4388_v25  ;;  %v4433_v24 = vld [vmem:[#allocation10 + $0x580] ss:$16 sps:$4 sm:$0xff]   ;;  %v4436_v25 = vld [vmem:[#allocation10 + $0x588] ss:$16 sps:$4 sm:$0xff]   ;;  %v1321_v33 = vrot.slane %v1298_v26, %v4927_v11 }
 0x217   :  { %3050 = vmatprep.subr.bf16.mxu0 %v4393_v27  ;;  %3214 = vmatprep.subr.bf16.mxu1 %v4396_v29  ;;  %v4441_v27 = vld [vmem:[#allocation10 + $0x5a4] ss:$16 sps:$4 sm:$0xff]   ;;  %v4444_v29 = vld [vmem:[#allocation10 + $0x5ac] ss:$16 sps:$4 sm:$0xff]   ;;  %v1170_v7 = vmul.f32 %v5042_v12, %v5042_v12 }
 0x218   :  { %v1338_v44 = vmul.f32 %v1321_v33, %v5009_v28  ;;  %v4502_v33 = vld [vmem:[#allocation10 + $0x6e8] ss:$16 sps:$4 sm:$0xff]  }
 0x219   :  { %v1208_v54 = vrot.slane %v1170_v7, 4 }
 0x21a   :  { %3051 = vmatpush1.bf16.msra.mxu0 %v4391_v31  ;;  %3215 = vmatpush1.bf16.msra.mxu1 %v4394_v32  ;;  %v4598_v47 = vpop.eup %4597  ;;  %v4439_v31 = vld [vmem:[#allocation10 + $0x5a0] ss:$16 sps:$4 sm:$0xff]   ;;  %v4442_v32 = vld [vmem:[#allocation10 + $0x5a8] ss:$16 sps:$4 sm:$0xff]   ;;  %v1388_v28 = vadd.f32 %v1363_v43, %v1338_v44  ;;  %v4513_v44 = vld [vmem:[#allocation10 + $0x724] ss:$16 sps:$4 sm:$0xff]  }
 0x21b   :  { %3052 = vmatprep.subr.bf16.mxu0 %v4399_v36  ;;  %3216 = vmatprep.subr.bf16.mxu1 %v4402_v37  ;;  %v1301_v9 = vmul.f32 %v4598_v47, %v1285_v21  ;;  %v4450_v36 = vld [vmem:[#allocation10 + $0x5cc] ss:$16 sps:$4 sm:$0xff]   ;;  %v1209_v59 = vadd.f32 %v1208_v54, %v1170_v7  ;;  %v4487_v47 = vld [vmem:[#allocation10 + $0x6a0] ss:$16 sps:$4 sm:$0xff]   ;;  %v4514_v43 = vld [vmem:[#allocation10 + $0x728] ss:$16 sps:$4 sm:$0xff]  }
 0x21c   :  { %v4517_v7 = vld [vmem:[#allocation10 + $0x740] ss:$16 sps:$4 sm:$0xff]  }
 0x21d   :  { %v1333_v37 = vrot.slane %v1301_v9, %v4927_v11  ;;  %v4501_v9 = vld [vmem:[#allocation10 + $0x6e4] ss:$16 sps:$4 sm:$0xff]  }
 0x21e   :  { %3053 = vmatpush1.bf16.msra.mxu0 %v4397_v39  ;;  %3217 = vmatpush1.bf16.msra.mxu1 %v4400_v41  ;;  %v4445_v39 = vld [vmem:[#allocation10 + $0x5c0] ss:$16 sps:$4 sm:$0xff]   ;;  %v4448_v41 = vld [vmem:[#allocation10 + $0x5c8] ss:$16 sps:$4 sm:$0xff]  }
 0x21f   :  { %3054 = vmatprep.subr.bf16.mxu0 %v4405_v23  ;;  %3218 = vmatprep.subr.bf16.mxu1 %v4408_v42  ;;  %v4453_v23 = vld [vmem:[#allocation10 + $0x5e4] ss:$16 sps:$4 sm:$0xff]   ;;  %v4456_v42 = vld [vmem:[#allocation10 + $0x5ec] ss:$16 sps:$4 sm:$0xff]   ;;  %v1341_v46 = vmul.f32 %v1333_v37, %v5015_v38  ;;  %v4460_v38 = vld [vmem:[#allocation10 + $0x608] ss:$16 sps:$4 sm:$0xff]  }
 0x222   :  { %3055 = vmatpush1.bf16.msra.mxu0 %v4403_v48  ;;  %3219 = vmatpush1.bf16.msra.mxu1 %v4406_v61  ;;  %v1375_v48 = vrot.slane %v4957_v50, %v4985_v45  ;;  %v4451_v61 = vld [vmem:[#allocation10 + $0x5e0] ss:$16 sps:$4 sm:$0xff]   ;;  %v4465_v50 = vld [vmem:[#allocation10 + $0x624] ss:$16 sps:$4 sm:$0xff]   ;;  %v4468_v45 = vld [vmem:[#allocation10 + $0x62c] ss:$16 sps:$4 sm:$0xff]  }
 0x223   :  { %3056 = vmatprep.subr.bf16.mxu0 %v4411_v51  ;;  %3220 = vmatprep.subr.bf16.mxu1 %v4414_v52  ;;  %v4459_v51 = vld [vmem:[#allocation10 + $0x604] ss:$16 sps:$4 sm:$0xff]   ;;  %v4462_v52 = vld [vmem:[#allocation10 + $0x60c] ss:$16 sps:$4 sm:$0xff]  }
 0x224   :  { %v1391_v63 = vadd.f32 %v1375_v48, %v1341_v46  ;;  %v4519_v46 = vld [vmem:[#allocation10 + $0x744] ss:$16 sps:$4 sm:$0xff]   ;;  %v4522_v48 = vld [vmem:[#allocation10 + $0x74c] ss:$16 sps:$4 sm:$0xff]  }
 0x226   :  { %3057 = vmatpush1.bf16.msra.mxu0 %v4409_v56  ;;  %3221 = vmatpush1.bf16.msra.mxu1 %v4412_v58  ;;  %v1396_v56 = vpack.c.bf16 %v1388_v28, %v1388_v28  ;;  %v1399_v58 = vpack.c.bf16 %v1391_v63, %v1391_v63  ;;  %v4528_v28 = vld [vmem:[#allocation10 + $0x76c] ss:$16 sps:$4 sm:$0xff]  }
 0x227   :  { %3058 = vmatprep.subr.bf16.mxu0 %v4417_v5  ;;  %3222 = vmatprep.subr.bf16.mxu1 %v4420_v57  ;;  %v4463_v5 = vld [vmem:[#allocation10 + $0x620] ss:$16 sps:$4 sm:$0xff]   ;;  %v4466_v57 = vld [vmem:[#allocation10 + $0x628] ss:$16 sps:$4 sm:$0xff]  }
 0x228   :  { %v4605_v63 = vld [vmem:[%s5084_s3] sm:$0xff] }
 0x229   :  { %v1281_v54 = vrot.slane %v4605_v63, %v5026_v19 }
 0x22a   :  { %3059 = vmatpush1.bf16.msra.mxu0 %v4415_v62  ;;  %3223 = vmatpush1.bf16.msra.mxu1 %v4418_v0  ;;  %v4474_v62 = vld [vmem:[#allocation10 + $0x64c] ss:$16 sps:$4 sm:$0xff]   ;;  %v1210_v0 = vrot.slane %v1209_v59, 2 }
 0x22b   :  { %3060 = vmatprep.subr.bf16.mxu0 %v4423_v1  ;;  %3224 = vmatprep.subr.bf16.mxu1 %v4426_v2  ;;  %v4469_v1 = vld [vmem:[#allocation10 + $0x640] ss:$16 sps:$4 sm:$0xff]   ;;  %v4472_v2 = vld [vmem:[#allocation10 + $0x648] ss:$16 sps:$4 sm:$0xff]  }
 0x22e   :  { %3061 = vmatpush1.bf16.msra.mxu0 %v4421_v4  ;;  %3225 = vmatpush1.bf16.msra.mxu1 %v4424_v53  ;;  %v4480_v4 = vld [vmem:[#allocation10 + $0x66c] ss:$16 sps:$4 sm:$0xff]   ;;  %v1211_v53 = vadd.f32 %v1210_v0, %v1209_v59  ;;  %v4537_v59 = vld [vmem:[#allocation10 + $0x7a4] ss:$16 sps:$4 sm:$0xff]  }
 0x22f   :  { %3062 = vmatprep.subr.bf16.mxu0 %v4429_v6  ;;  %3226 = vmatprep.subr.bf16.mxu1 %v4432_v8  ;;  %v4475_v6 = vld [vmem:[#allocation10 + $0x660] ss:$16 sps:$4 sm:$0xff]   ;;  %v4478_v8 = vld [vmem:[#allocation10 + $0x668] ss:$16 sps:$4 sm:$0xff]   ;;  %v4543_v0 = vld [vmem:[#allocation10 + $0x7c4] ss:$16 sps:$4 sm:$0xff]  }
 0x232   :  { %3063 = vmatpush1.bf16.msra.mxu0 %v4427_v14  ;;  %3227 = vmatpush1.bf16.msra.mxu1 %v4430_v16  ;;  %v4486_v14 = vld [vmem:[#allocation10 + $0x68c] ss:$16 sps:$4 sm:$0xff]   ;;  %v1212_v16 = vrot.slane %v1211_v53, 1 }
 0x233   :  { %3064 = vmatprep.subr.bf16.mxu0 %v4435_v18  ;;  %3228 = vmatprep.subr.bf16.mxu1 %v4438_v20  ;;  %v4484_v18 = vld [vmem:[#allocation10 + $0x688] ss:$16 sps:$4 sm:$0xff]   ;;  %v4489_v20 = vld [vmem:[#allocation10 + $0x6a4] ss:$16 sps:$4 sm:$0xff]  }
 0x234   :  { %v1213_v21 = vadd.f32 %v1212_v16, %v1211_v53  ;;  %v4549_v53 = vld [vmem:[#allocation10 + $0x7e4] ss:$16 sps:$4 sm:$0xff]   ;;  %v4550_v16 = vld [vmem:[#allocation10 + $0x7e8] ss:$16 sps:$4 sm:$0xff]  }
 0x236   :  { %3065 = vmatpush1.bf16.msra.mxu0 %v4433_v24  ;;  %3229 = vmatpush1.bf16.msra.mxu1 %v4436_v25  ;;  %v4495_v24 = vld [vmem:[#allocation10 + $0x6c4] ss:$16 sps:$4 sm:$0xff]   ;;  %v4498_v25 = vld [vmem:[#allocation10 + $0x6cc] ss:$16 sps:$4 sm:$0xff]   ;;  %v1226_v26 = vmul.f32 0.125, %v1213_v21 }
 0x237   :  { %3066 = vmatprep.subr.bf16.mxu0 %v4441_v27  ;;  %3230 = vmatprep.subr.bf16.mxu1 %v4444_v29  ;;  %v4493_v27 = vld [vmem:[#allocation10 + $0x6c0] ss:$16 sps:$4 sm:$0xff]   ;;  %v4496_v29 = vld [vmem:[#allocation10 + $0x6c8] ss:$16 sps:$4 sm:$0xff]  }
 0x23a   :  { %3067 = vmatpush1.bf16.msra.mxu0 %v4439_v31  ;;  %3231 = vmatpush1.bf16.msra.mxu1 %v4442_v32  ;;  %v1234_v31 = vmax.f32 %v1226_v26, 0.0  ;;  %v4499_v32 = vld [vmem:[#allocation10 + $0x6e0] ss:$16 sps:$4 sm:$0xff]  }
 0x23b   :  { %3068 = vmatprep.subr.bf16.mxu0 %v4447_v34  ;;  %3232 = vmatprep.subr.bf16.mxu1 %v4450_v36  ;;  %v4507_v34 = vld [vmem:[#allocation10 + $0x704] ss:$16 sps:$4 sm:$0xff]   ;;  %v4510_v36 = vld [vmem:[#allocation10 + $0x70c] ss:$16 sps:$4 sm:$0xff]  }
 0x23c   :  { %v1242_v37 = vadd.f32 1e-05, %v1234_v31  ;;  %v4562_v26 = vld [vmem:[#allocation11 + $0xd0] sm:$0xff]   ;;  %v4567_v31 = vld [vmem:[#allocation11 + $0x18] sm:$0xff]  }
 0x23e   :  { %3069 = vmatpush1.bf16.msra.mxu0 %v4445_v39  ;;  %3233 = vmatpush1.bf16.msra.mxu1 %v4448_v41  ;;  %v4505_v39 = vld [vmem:[#allocation10 + $0x700] ss:$16 sps:$4 sm:$0xff]   ;;  %v4508_v41 = vld [vmem:[#allocation10 + $0x708] ss:$16 sps:$4 sm:$0xff]   ;;  %4599 = vrsqrt.f32 %v1242_v37 }
 0x23f   :  { %3070 = vmatprep.subr.bf16.mxu0 %v4453_v23  ;;  %3234 = vmatprep.subr.bf16.mxu1 %v4456_v42  ;;  %v4516_v23 = vld [vmem:[#allocation10 + $0x72c] ss:$16 sps:$4 sm:$0xff]   ;;  %v4511_v42 = vld [vmem:[#allocation10 + $0x720] ss:$16 sps:$4 sm:$0xff]  }
 0x240   :  { %v4572_v37 = vld [vmem:[#allocation11 + $0xa0] sm:$0xff]  }
 0x242   :  { %3071 = vmatpush1.bf16.msra.mxu0 %v4451_v61  ;;  %3235 = vmatpush1.bf16.msra.mxu1 %v4454_v49  ;;  %v4520_v61 = vld [vmem:[#allocation10 + $0x748] ss:$16 sps:$4 sm:$0xff]   ;;  %v4525_v49 = vld [vmem:[#allocation10 + $0x764] ss:$16 sps:$4 sm:$0xff]  }
 0x243   :  { %3081 = vmatprep.subr.bf16.mxu0 %v4459_v51  ;;  %3245 = vmatprep.subr.bf16.mxu1 %v4462_v52  ;;  %v4523_v51 = vld [vmem:[#allocation10 + $0x760] ss:$16 sps:$4 sm:$0xff]   ;;  %v4526_v52 = vld [vmem:[#allocation10 + $0x768] ss:$16 sps:$4 sm:$0xff]  }
 0x245   :  { %3073 = vmatmul.mubr.bf16.vlgmr.msra.gmra.mrb[8].mxu0 %v1396_v56  ;;  %3237 = vmatmul.mubr.bf16.vlgmr.msra.gmra.mrb[8].mxu1 %v1396_v56 }
 0x246   :  { %3082 = vmatpush1.bf16.msra.mxu0 %v4457_v40  ;;  %3246 = vmatpush1.bf16.msra.mxu1 %v4460_v38  ;;  %v4531_v40 = vld [vmem:[#allocation10 + $0x784] ss:$16 sps:$4 sm:$0xff]   ;;  %v4534_v38 = vld [vmem:[#allocation10 + $0x78c] ss:$16 sps:$4 sm:$0xff]  }
 0x247   :  { %3083 = vmatprep.subr.bf16.mxu0 %v4465_v50  ;;  %3247 = vmatprep.subr.bf16.mxu1 %v4468_v45  ;;  %v4529_v50 = vld [vmem:[#allocation10 + $0x780] ss:$16 sps:$4 sm:$0xff]   ;;  %v4532_v45 = vld [vmem:[#allocation10 + $0x788] ss:$16 sps:$4 sm:$0xff]  }
 0x248   :  { %3113 = vmatprep.mubr.bf16.mxu0 %v1399_v58  ;;  %3277 = vmatprep.mubr.bf16.mxu1 %v1399_v58  ;;  %v4600_v56 = vpop.eup %4599 }
 0x249   :  { %v1300_v58 = vmul.f32 %v4600_v56, %v1281_v54 }
 0x24a   :  { %3084 = vmatpush1.bf16.msra.mxu0 %v4463_v5  ;;  %3248 = vmatpush1.bf16.msra.mxu1 %v4466_v57  ;;  %v4540_v5 = vld [vmem:[#allocation10 + $0x7ac] ss:$16 sps:$4 sm:$0xff]   ;;  %v4535_v57 = vld [vmem:[#allocation10 + $0x7a0] ss:$16 sps:$4 sm:$0xff]  }
 0x24b   :  { %3085 = vmatprep.subr.bf16.mxu0 %v4471_v60  ;;  %3249 = vmatprep.subr.bf16.mxu1 %v4474_v62  ;;  %v4538_v60 = vld [vmem:[#allocation10 + $0x7a8] ss:$16 sps:$4 sm:$0xff]   ;;  %v1329_v62 = vrot.slane %v1300_v58, %v4927_v11 }
 0x24e   :  { %3086 = vmatpush1.bf16.msra.mxu0 %v4469_v1  ;;  %3250 = vmatpush1.bf16.msra.mxu1 %v4472_v2  ;;  %v4546_v1 = vld [vmem:[#allocation10 + $0x7cc] ss:$16 sps:$4 sm:$0xff]   ;;  %v4541_v2 = vld [vmem:[#allocation10 + $0x7c0] ss:$16 sps:$4 sm:$0xff]  }
 0x24f   :  { %3087 = vmatprep.subr.bf16.mxu0 %v4477_v3  ;;  %3251 = vmatprep.subr.bf16.mxu1 %v4480_v4  ;;  %v4544_v3 = vld [vmem:[#allocation10 + $0x7c8] ss:$16 sps:$4 sm:$0xff]   ;;  %v1340_v4 = vmul.f32 %v1329_v62, %v5042_v12  ;;  %v4556_v12 = vld [vmem:[#allocation11 + $0x80] sm:$0xff]  }
 0x252   :  { %3088 = vmatpush1.bf16.msra.mxu0 %v4475_v6  ;;  %3252 = vmatpush1.bf16.msra.mxu1 %v4478_v8  ;;  %v4552_v6 = vld [vmem:[#allocation10 + $0x7ec] ss:$16 sps:$4 sm:$0xff]  }
 0x253   :  { %3089 = vmatprep.subr.bf16.mxu0 %v4483_v55  ;;  %3253 = vmatprep.subr.bf16.mxu1 %v4486_v14  ;;  %v4606_v8 = vld [vmem:[#allocation8] sm:$0xff]  ;;  %v4547_v14 = vld [vmem:[#allocation10 + $0x7e0] ss:$16 sps:$4 sm:$0xff]  }
 0x254   :  { %v1371_v55 = vrot.slane %v4606_v8, %v5026_v19  ;;  %v4559_v19 = vld [vmem:[#allocation11 + $0x8] sm:$0xff]  }
 0x256   :  { %3090 = vmatpush1.bf16.msra.mxu0 %v4481_v17  ;;  %3254 = vmatpush1.bf16.msra.mxu1 %v4484_v18  ;;  %v1390_v17 = vadd.f32 %v1371_v55, %v1340_v4  ;;  %v4553_v18 = vld [vmem:[#allocation11 + $0x40] sm:$0xff]   ;;  %v4048_v55 = vld [vmem:[%s5089_s8] ss:$0 sm:$0xff]  ;;  %s4739_s8 = scalar_lea.vmem %s3651_s21, 128 }
 0x257   :  { %3091 = vmatprep.subr.bf16.mxu0 %v4489_v20  ;;  %3255 = vmatprep.subr.bf16.mxu1 %v4492_v10  ;;  %v4554_v20 = vld [vmem:[#allocation11 + $0xc0] sm:$0xff]   ;;  %p4740_p6 = scmp.ne.s32.totalorder %s3651_s21, %s4739_s8  ;;  %p4745_p8 = scmp.lt.s32.totalorder %s4739_s8, %s4739_s8 }
 0x258   :  { %v4555_v10 = vld [vmem:[#allocation11] sm:$0xff]   ;;  %v1398_v21 = vpack.c.bf16 %v1390_v17, %v1390_v17 }
 0x259   :  { %p4746_p9 = por %p4745_p8, %p4744_p7 }
 0x25a   :  { %3092 = vmatpush1.bf16.msra.mxu0 %v4487_v47  ;;  %3256 = vmatpush1.bf16.msra.mxu1 %v4490_v22  ;;  %v4557_v47 = vld [vmem:[#allocation11 + $0x48] sm:$0xff]  }
 0x25b   :  { %3093 = vmatprep.subr.bf16.mxu0 %v4495_v24  ;;  %3257 = vmatprep.subr.bf16.mxu1 %v4498_v25  ;;  %v4558_v22 = vld [vmem:[#allocation11 + $0xc8] sm:$0xff]   ;;  %v4561_v25 = vld [vmem:[#allocation11 + $0x50] sm:$0xff]   ;;  %p4747_p10 = pnand %p4746_p9, %p4740_p6 }
 0x25c   :  { %v4560_v24 = vld [vmem:[#allocation11 + $0x88] sm:$0xff]  }
 0x25e   :  { %3094 = vmatpush1.bf16.msra.mxu0 %v4493_v27  ;;  %3258 = vmatpush1.bf16.msra.mxu1 %v4496_v29  ;;  %v4563_v27 = vld [vmem:[#allocation11 + $0x10] sm:$0xff]  }
 0x25f   :  { %3095 = vmatprep.subr.bf16.mxu0 %v4501_v9  ;;  %3259 = vmatprep.subr.bf16.mxu1 %v4504_v30  ;;  %v4564_v29 = vld [vmem:[#allocation11 + $0x90] sm:$0xff]   ;;  %v4565_v9 = vld [vmem:[#allocation11 + $0x58] sm:$0xff]  }
 0x260   :  { %v4566_v30 = vld [vmem:[#allocation11 + $0xd8] sm:$0xff]  }
 0x262   :  { %3096 = vmatpush1.bf16.msra.mxu0 %v4499_v32  ;;  %3260 = vmatpush1.bf16.msra.mxu1 %v4502_v33  ;;  %v4568_v32 = vld [vmem:[#allocation11 + $0x98] sm:$0xff]   ;;  %v4569_v33 = vld [vmem:[#allocation11 + $0x60] sm:$0xff]  }
 0x263   :  { %3097 = vmatprep.subr.bf16.mxu0 %v4507_v34  ;;  %3261 = vmatprep.subr.bf16.mxu1 %v4510_v36  ;;  %v4570_v34 = vld [vmem:[#allocation11 + $0xe0] sm:$0xff]  }
 0x264   :  { %v4571_v36 = vld [vmem:[#allocation11 + $0x20] sm:$0xff]  }
 0x266   :  { %3098 = vmatpush1.bf16.msra.mxu0 %v4505_v39  ;;  %3262 = vmatpush1.bf16.msra.mxu1 %v4508_v41  ;;  %v4573_v39 = vld [vmem:[#allocation11 + $0x68] sm:$0xff]  }
 0x267   :  { %3099 = vmatprep.subr.bf16.mxu0 %v4513_v44  ;;  %3263 = vmatprep.subr.bf16.mxu1 %v4516_v23  ;;  %v4574_v41 = vld [vmem:[#allocation11 + $0xe8] sm:$0xff]  }
 0x268   :  { %v4575_v44 = vld [vmem:[#allocation11 + $0x28] sm:$0xff]  }
 0x269   :  { %v4576_v23 = vld [vmem:[#allocation11 + $0xa8] sm:$0xff]  }
 0x26a   :  { %3100 = vmatpush1.bf16.msra.mxu0 %v4511_v42  ;;  %3264 = vmatpush1.bf16.msra.mxu1 %v4514_v43  ;;  %v4577_v42 = vld [vmem:[#allocation11 + $0x70] sm:$0xff]  }
 0x26b   :  { %3101 = vmatprep.subr.bf16.mxu0 %v4519_v46  ;;  %3265 = vmatprep.subr.bf16.mxu1 %v4522_v48  ;;  %v4578_v43 = vld [vmem:[#allocation11 + $0xf0] sm:$0xff]  }
 0x26c   :  { %v4579_v46 = vld [vmem:[#allocation11 + $0x30] sm:$0xff]  }
 0x26d   :  { %v4580_v48 = vld [vmem:[#allocation11 + $0xb0] sm:$0xff]  }
 0x26e   :  { %3102 = vmatpush1.bf16.msra.mxu0 %v4517_v7  ;;  %3266 = vmatpush1.bf16.msra.mxu1 %v4520_v61  ;;  %v4581_v7 = vld [vmem:[#allocation11 + $0x78] sm:$0xff]  }
 0x26f   :  { %3103 = vmatprep.subr.bf16.mxu0 %v4525_v49  ;;  %3267 = vmatprep.subr.bf16.mxu1 %v4528_v28  ;;  %v4582_v61 = vld [vmem:[#allocation11 + $0xf8] sm:$0xff]  }
 0x270   :  { %v4583_v49 = vld [vmem:[#allocation11 + $0x38] sm:$0xff]  }
 0x271   :  { %v4584_v28 = vld [vmem:[#allocation11 + $0xb8] sm:$0xff]  }
 0x272   :  { %3104 = vmatpush1.bf16.msra.mxu0 %v4523_v51  ;;  %3268 = vmatpush1.bf16.msra.mxu1 %v4526_v52  ;;  %v1656_v51 = vld [vmem:[%s5087_s6] sm:$0xf] }
 0x273   :  { %3105 = vmatprep.subr.bf16.mxu0 %v4531_v40  ;;  %3269 = vmatprep.subr.bf16.mxu1 %v4534_v38  ;;  %v1661_v52 = vrot.slane %v1656_v51, %v4927_v11  ;;  %v1669_v63 = vrot.slane %v1656_v51, %v4944_v35  ;;  %v1665_v54 = vrot.slane %v1656_v51, %v4932_v13 }
 0x274   :  { %v1673_v40 = vrot.slane %v1656_v51, %v4937_v15 }
 0x276   :  { %3106 = vmatpush1.bf16.msra.mxu0 %v4529_v50  ;;  %3270 = vmatpush1.bf16.msra.mxu1 %v4532_v45 }
 0x277   :  { %3107 = vmatprep.subr.bf16.mxu0 %v4537_v59  ;;  %3271 = vmatprep.subr.bf16.mxu1 %v4540_v5 }
 0x27a   :  { %3108 = vmatpush1.bf16.msra.mxu0 %v4535_v57  ;;  %3272 = vmatpush1.bf16.msra.mxu1 %v4538_v60 }
 0x27b   :  { %3109 = vmatprep.subr.bf16.mxu0 %v4543_v0  ;;  %3273 = vmatprep.subr.bf16.mxu1 %v4546_v1 }
 0x27e   :  { %3110 = vmatpush1.bf16.msra.mxu0 %v4541_v2  ;;  %3274 = vmatpush1.bf16.msra.mxu1 %v4544_v3 }
 0x27f   :  { %3111 = vmatprep.subr.bf16.mxu0 %v4549_v53  ;;  %3275 = vmatprep.subr.bf16.mxu1 %v4552_v6 }
 0x282   :  { %3112 = vmatpush1.bf16.msra.mxu0 %v4547_v14  ;;  %3276 = vmatpush1.bf16.msra.mxu1 %v4550_v16 }
 0x283   :  { %4082 = vmatprep.subr.bf16.mxu0 %v4553_v18  ;;  %4104 = vmatprep.subr.bf16.mxu1 %v4554_v20 }
 0x285   :  { %3114 = vmatmul.mubr.bf16.vlgmr.msra.gmra.mrb[8].mxu0 %v1398_v21  ;;  %3278 = vmatmul.mubr.bf16.vlgmr.msra.gmra.mrb[8].mxu1 %v1398_v21 }
 0x286   :  { %4083 = vmatpush3.bf16.msra.mxu0 %v4555_v10  ;;  %4105 = vmatpush3.bf16.msra.mxu1 %v4556_v12 }
 0x287   :  { %4084 = vmatprep.subr.bf16.mxu0 %v4557_v47  ;;  %4106 = vmatprep.subr.bf16.mxu1 %v4558_v22 }
 0x28a   :  { %4085 = vmatpush3.bf16.msra.mxu0 %v4559_v19  ;;  %4107 = vmatpush3.bf16.msra.mxu1 %v4560_v24 }
 0x28b   :  { %4086 = vmatprep.subr.bf16.mxu0 %v4561_v25  ;;  %4108 = vmatprep.subr.bf16.mxu1 %v4562_v26 }
 0x28e   :  { %4087 = vmatpush3.bf16.msra.mxu0 %v4563_v27  ;;  %4109 = vmatpush3.bf16.msra.mxu1 %v4564_v29 }
 0x28f   :  { %4088 = vmatprep.subr.bf16.mxu0 %v4565_v9  ;;  %4110 = vmatprep.subr.bf16.mxu1 %v4566_v30 }
 0x292   :  { %4089 = vmatpush3.bf16.msra.mxu0 %v4567_v31  ;;  %4111 = vmatpush3.bf16.msra.mxu1 %v4568_v32 }
 0x293   :  { %4090 = vmatprep.subr.bf16.mxu0 %v4569_v33  ;;  %4112 = vmatprep.subr.bf16.mxu1 %v4570_v34 }
 0x296   :  { %4091 = vmatpush3.bf16.msra.mxu0 %v4571_v36  ;;  %4113 = vmatpush3.bf16.msra.mxu1 %v4572_v37 }
 0x297   :  { %4092 = vmatprep.subr.bf16.mxu0 %v4573_v39  ;;  %4114 = vmatprep.subr.bf16.mxu1 %v4574_v41 }
 0x29a   :  { %4093 = vmatpush3.bf16.msra.mxu0 %v4575_v44  ;;  %4115 = vmatpush3.bf16.msra.mxu1 %v4576_v23 }
 0x29b   :  { %4094 = vmatprep.subr.bf16.mxu0 %v4577_v42  ;;  %4116 = vmatprep.subr.bf16.mxu1 %v4578_v43 }
 0x29e   :  { %4095 = vmatpush3.bf16.msra.mxu0 %v4579_v46  ;;  %4117 = vmatpush3.bf16.msra.mxu1 %v4580_v48 }
 0x29f   :  { %4096 = vmatprep.subr.bf16.mxu0 %v4581_v7  ;;  %4118 = vmatprep.subr.bf16.mxu1 %v4582_v61 }
 0x2a2   :  { %4097 = vmatpush3.bf16.msra.mxu0 %v4583_v49  ;;  %4119 = vmatpush3.bf16.msra.mxu1 %v4584_v28 }
 0x358   :  { %v3115_v38 = vpop.f32.mrb[8].mxu0  ;;  %v3279_v56 = vpop.f32.mrb[8].mxu1 }
 0x359   :  { %v4126_v50 = vadd.f32 %v3115_v38, %v1661_v52  ;;  %v4128_v45 = vadd.f32 %v3279_v56, %v1669_v63  ;;  %v3117_v58 = vpop.f32.mrb[9].mxu0  ;;  %v3281_v59 = vpop.f32.mrb[9].mxu1 }
 0x35a   :  { %v4127_v5 = vadd.f32 %v3117_v58, %v1665_v54  ;;  %v4129_v57 = vadd.f32 %v3281_v59, %v1673_v40  ;;  %v3119_v60 = vpop.f32.mrb[10].mxu0  ;;  %v3283_v62 = vpop.f32.mrb[10].mxu1 }
 0x35b   :  { %v3286_v0 = vmax.f32 %v4126_v50, 0.0  ;;  %v3288_v1 = vmax.f32 %v4128_v45, 0.0  ;;  %v3120_v2 = vpop.f32.mrb[11].mxu0  ;;  %v3284_v11 = vpop.f32.mrb[11].mxu1 }
 0x35c   :  { %v3287_v3 = vmax.f32 %v4127_v5, 0.0  ;;  %v3289_v35 = vmax.f32 %v4129_v57, 0.0 }
 0x35d   :  { %v3290_v53 = vpack.c.bf16 %v3286_v0, %v3286_v0  ;;  %v3292_v15 = vpack.c.bf16 %v3288_v1, %v3288_v1 }
 0x35e   :  { %v3291_v4 = vpack.c.bf16 %v3287_v3, %v3287_v3  ;;  %v3293_v13 = vpack.c.bf16 %v3289_v35, %v3289_v35 }
 0x360   :  { %3589 = vmatprep.mubr.bf16.mxu0 %v3291_v4  ;;  %3629 = vmatprep.mubr.bf16.mxu1 %v3293_v13 }
 0x361   :  { %3590 = vmatmul.mubr.bf16.vlgmr.msra.gmra.mrb[12].mxu0 %v3290_v53  ;;  %3630 = vmatmul.mubr.bf16.vlgmr.msra.gmra.mrb[12].mxu1 %v3292_v15 }
 0x434   :  { %v4098_v6 = vpop.f32.mrb[12].mxu0  ;;  %v4120_v8 = vpop.f32.mrb[12].mxu1 }
 0x435   :  { %v4099_v14 = vpop.f32.mrb[13].mxu0  ;;  %v4121_v16 = vpop.f32.mrb[13].mxu1 }
 0x436   :  { %v4100_v17 = vadd.f32 %v4099_v14, %v4098_v6  ;;  %v4122_v18 = vadd.f32 %v4121_v16, %v4120_v8  ;;  %v4101_v20 = vpop.f32.mrb[14].mxu0  ;;  %v4123_v10 = vpop.f32.mrb[14].mxu1 }
 0x437   :  { %v4102_v12 = vpop.f32.mrb[15].mxu0  ;;  %v4124_v21 = vpop.f32.mrb[15].mxu1 }
 0x438   :  { %v3592_v47 = vadd.f32 %v4100_v17, %v4048_v55 }
 0x43a   :  { %v3632_v22 = vadd.f32 %v4122_v18, %v3592_v47 }
 0x43c   :  { %v4081_v19 = vmul.f32 -1.442695, %v3632_v22 }
 0x43e   :  { %4601 = vpow2.f32 %v4081_v19 }
 0x448   :  { %v4602_v24 = vpop.eup %4601 }
 0x449   :  { %v3640_v25 = vadd.f32 1.0, %v4602_v24 }
 0x44b   :  { %4603 = vrcp.f32 %v3640_v25 }
 0x455   :  { %v4604_v26 = vpop.eup %4603 }
 0x456   :  { %3643 = vst [vmem:[#allocation13] sm:$0xff] %v4604_v26 }
 0x457   :  { %4750 = shalt.err (!%p4747_p10)
}
 0x458   :  { %s4751_s4 = scalar_lea.hbm %s5090_s9, 128 }
 0x459   :  { %p4752_p11 = scmp.ne.s32.totalorder %s5090_s9, %s4751_s4  ;;  %p4755_p12 = scmp.lt.u32.totalorder %s4751_s4, %s5090_s9 }
 0x45b   :  { %p4757_p13 = pnand %p4755_p12, %p4752_p11 }
 0x45d   :  { %4760 = shalt.err (!%p4757_p13)
}
 0x45e   :  { %3653 = dma.vmem_to_hbm [thread:$0]  %s3651_s21, 128, %s5090_s9, [#allocation4]  }
 0x45f   :  { %4769 = dma.done.wait [#allocation4], 128  }
 0x460   :  { %4770 = vsyncadd [#allocation4], 4294967168 }
 0x461   :  { %3657 = vsyncpa [#allocation3], 1 }
 0x462   :  { %3658 = vsyncpa [#allocation6], 1 }
 0x463   :  { %3659 = vsyncpa [#allocation9], 1 }
 0x464   :  { %3660 = vsyncpa [#allocation12], 1 }
 0x465   :  { %3661 = vsyncpa [#allocation4], 1 }

</bundles_post_ra>
